<compile_context>
chip_gen: v5e
topology: v5e:2x2
jax: 0.10.0
libtpu: 0.0.40
codegen_flags: <defaults>
</compile_context>

<pallas_src>
import functools
import math

import jax
import jax.numpy as jnp
from jax.experimental import pallas as pl
from jax.experimental.pallas import tpu as pltpu


# Large-negative (finite) mask value, like standard TPU flash kernels, to avoid
# -inf arithmetic corner cases.
_MASK_VALUE = -0.7 * 3.402823466e38


def _attn_block_kernel(dec_ref, k_ref, v_ref,
                       wq_ref, bq_ref, wo_ref, bo_ref, gamma_ref, beta_ref,
                       out_ref,
                       q_scr, m_scr, l_scr, acc_scr,
                       *, num_heads, d_k, d_v, scale, eps, kv_len, kv_tile):
    """Grid = (batch, q-tile, kv-tile). kv is the last ('arbitrary') axis;
    online-softmax state lives in VMEM scratch across kv steps."""
    j = pl.program_id(2)
    n_kv = pl.num_programs(2)

    # ---- once per (batch, q-tile): project + head-split Q, reset accumulators.
    # (reshape/transpose here is once per q-tile, not per kv step)
    @pl.when(j == 0)
    def _init():
        dec = dec_ref[0]                                               # (tq, H)
        q = jnp.dot(dec, wq_ref[...],
                    preferred_element_type=jnp.float32) + bq_ref[...]  # (tq, nh*dk)
        tq = q.shape[0]
        q_scr[...] = q.reshape(tq, num_heads, d_k).transpose(1, 0, 2).astype(q_scr.dtype)
        m_scr[...] = jnp.full_like(m_scr, _MASK_VALUE)
        l_scr[...] = jnp.zeros_like(l_scr)
        acc_scr[...] = jnp.zeros_like(acc_scr)

    kh = k_ref[0]                                                      # (nh, tkv, dk)
    vh = v_ref[0]                                                      # (nh, tkv, dv)

    # Heads-batched scores; softmax scale applied to the f32 scores.
    s = jnp.einsum("hqd,hkd->hqk", q_scr[...], kh,
                   preferred_element_type=jnp.float32) * scale         # (nh, tq, tkv)

    if kv_len % kv_tile != 0:   # static check: mask only exists when Te was padded
        col = j * kv_tile + jax.lax.broadcasted_iota(jnp.int32, s.shape, 2)
        s = jnp.where(col < kv_len, s, _MASK_VALUE)

    # Online softmax update.
    m_prev = m_scr[...]
    m_new = jnp.maximum(m_prev, jnp.max(s, axis=-1, keepdims=True))
    alpha = jnp.exp(m_prev - m_new)
    p = jnp.exp(s - m_new)
    l_scr[...] = alpha * l_scr[...] + jnp.sum(p, axis=-1, keepdims=True)
    acc_scr[...] = alpha * acc_scr[...] + jnp.einsum(
        "hqk,hkd->hqd", p.astype(vh.dtype), vh,
        preferred_element_type=jnp.float32)                            # (nh, tq, dv)
    m_scr[...] = m_new

    # ---- last kv step: normalize, output-project, residual + LayerNorm, store.
    @pl.when(j == n_kv - 1)
    def _finish():
        # exact reciprocal: epilogue runs once per q-tile, so cost is negligible.
        ctx = acc_scr[...] * pl.reciprocal(l_scr[...], approx=False)   # (nh, tq, dv)
        tq = ctx.shape[1]
        attn = ctx.transpose(1, 0, 2).reshape(tq, num_heads * d_v)     # (tq, nh*dv)
        o = jnp.dot(attn.astype(kh.dtype), wo_ref[...],
                    preferred_element_type=jnp.float32) + bo_ref[...]
        x = dec_ref[0].astype(jnp.float32) + o                         # residual
        mean = jnp.mean(x, axis=-1, keepdims=True)
        c = x - mean
        var = jnp.mean(c * c, axis=-1, keepdims=True)
        y = c * jax.lax.rsqrt(var + eps)
        y = y * gamma_ref[...] + beta_ref[...]
        out_ref[0] = y.astype(out_ref.dtype)


def _round_up(x, m):
    return ((x + m - 1) // m) * m


def transformer_enc_dec_connection_block(encoder_outputs, decoder_hidden, params,
                                         *, num_heads, d_k, d_v, eps=1e-5, mask=None):
    assert mask is None, "attention mask is not supported (call site passes mask=None)"
    B, Td, H = decoder_hidden.shape
    Be, Te, He = encoder_outputs.shape
    assert Be == B and He == H

    act_dt = decoder_hidden.dtype

    # ---- chip-aware VMEM budget and tile caps --------------------------------
    try:
        vmem_cap = int(pltpu.get_tpu_info().vmem_capacity_bytes)
    except Exception:
        vmem_cap = 64 * 1024 * 1024          # conservative (v7x-sized) default
    vmem_limit = (vmem_cap * 3) // 4         # headroom for compiler scratch / dbl-buffers
    big_vmem = vmem_cap >= 100 * 1024 * 1024  # 128 MiB parts (v5e / v6e)
    tq_cap = 512 if big_vmem else 256
    tkv_cap = 512 if big_vmem else 256

    tq = min(tq_cap, _round_up(Td, 8))
    n_tq = -(-Td // tq)
    if (not big_vmem) and B * n_tq < 2 and tq > 8:
        # v7x: 2 TensorCores are sharded over the parallel axes; ensure both get work.
        tq = _round_up(max(8, (tq + 1) // 2), 8)
        n_tq = -(-Td // tq)
    Td_pad = n_tq * tq

    tkv = min(tkv_cap, _round_up(Te, 8))
    n_kv = -(-Te // tkv)
    Te_pad = n_kv * tkv

    # ---- one-time K/V projection (XLA matmul; no per-q-tile re-projection) ---
    wk = params["wk"].astype(act_dt)
    bk = params["bk"].astype(act_dt)
    wv = params["wv"].astype(act_dt)
    bv = params["bv"].astype(act_dt)
    enc = encoder_outputs.astype(act_dt)
    k = jnp.einsum("bth,hd->btd", enc, wk, preferred_element_type=jnp.float32) + bk[0]
    v = jnp.einsum("bth,hd->btd", enc, wv, preferred_element_type=jnp.float32) + bv[0]
    kh = k.reshape(B, Te, num_heads, d_k).transpose(0, 2, 1, 3).astype(act_dt)
    vh = v.reshape(B, Te, num_heads, d_v).transpose(0, 2, 1, 3).astype(act_dt)

    # ---- pad ragged sequence lengths to the tile (kv side masked in-kernel) --
    dec = decoder_hidden
    if Td_pad != Td:
        dec = jnp.pad(dec, ((0, 0), (0, Td_pad - Td), (0, 0)))
    if Te_pad != Te:
        kh = jnp.pad(kh, ((0, 0), (0, 0), (0, Te_pad - Te), (0, 0)))
        vh = jnp.pad(vh, ((0, 0), (0, 0), (0, Te_pad - Te), (0, 0)))

    # Remaining weights go into the kernel; match the activation dtype for the MXU.
    wq = params["wq"].astype(act_dt)
    bq = params["bq"].astype(act_dt)
    wo = params["wo"].astype(act_dt)
    bo = params["bo"].astype(act_dt)
    gamma = params["gamma"].astype(jnp.float32)
    beta = params["beta"].astype(jnp.float32)

    kernel = functools.partial(
        _attn_block_kernel, num_heads=num_heads, d_k=d_k, d_v=d_v,
        scale=1.0 / math.sqrt(d_k), eps=eps, kv_len=Te, kv_tile=tkv)

    def build(single_buffer_weights):
        wkw = {"pipeline_mode": pl.Buffered(1)} if single_buffer_weights else {}

        def wspec(arr):
            nd = arr.ndim
            return pl.BlockSpec(arr.shape, lambda *idx: (0,) * nd, **wkw)

        grid_spec = pltpu.PrefetchScalarGridSpec(
            num_scalar_prefetch=0,
            grid=(B, n_tq, n_kv),
            in_specs=[
                pl.BlockSpec((1, tq, H), lambda b, i, j: (b, i, 0)),            # decoder
                pl.BlockSpec((1, num_heads, tkv, d_k), lambda b, i, j: (b, 0, j, 0)),  # K
                pl.BlockSpec((1, num_heads, tkv, d_v), lambda b, i, j: (b, 0, j, 0)),  # V
                wspec(wq), wspec(bq), wspec(wo), wspec(bo),
                wspec(gamma), wspec(beta),
            ],
            out_specs=pl.BlockSpec((1, tq, H), lambda b, i, j: (b, i, 0)),
            scratch_shapes=[
                pltpu.VMEM((num_heads, tq, d_k), act_dt),      # Q (head-split)
                pltpu.VMEM((num_heads, tq, 1), jnp.float32),   # running max (pads to 128 lanes)
                pltpu.VMEM((num_heads, tq, 1), jnp.float32),   # running sum  (accounted in tiles)
                pltpu.VMEM((num_heads, tq, d_v), jnp.float32)  # context accumulator
            ],
        )
        return pl.pallas_call(
            kernel,
            out_shape=jax.ShapeDtypeStruct((B, Td_pad, H), act_dt),
            grid_spec=grid_spec,
            compiler_params=pltpu.CompilerParams(
                dimension_semantics=("parallel", "parallel", "arbitrary"),
                vmem_limit_bytes=vmem_limit),
        )

    args = (dec, kh, vh, wq, bq, wo, bo, gamma, beta)
    try:
        out = build(True)(*args)
    except Exception:
        # pipeline_mode=pl.Buffered(1) not supported on this jax version: fall back
        # to default double-buffered constants (correctness unchanged).
        out = build(False)(*args)

    if Td_pad != Td:
        out = out[:, :Td]
    return out


def init_params(key, hidden_dim, d_k, d_v, num_heads, dtype=jnp.float32):
    ks = jax.random.split(key, 8)
    hd_k = num_heads * d_k
    hd_v = num_heads * d_v

    def lin(k, fan_in, fan_out):
        bound = 1.0 / math.sqrt(fan_in)
        return jax.random.uniform(k, (fan_in, fan_out), dtype, -bound, bound)

    return {
        "wq": lin(ks[0], hidden_dim, hd_k), "bq": jnp.zeros((1, hd_k), dtype),
        "wk": lin(ks[1], hidden_dim, hd_k), "bk": jnp.zeros((1, hd_k), dtype),
        "wv": lin(ks[2], hidden_dim, hd_v), "bv": jnp.zeros((1, hd_v), dtype),
        "wo": lin(ks[3], hd_v, hidden_dim), "bo": jnp.zeros((1, hidden_dim), dtype),
        "gamma": jnp.ones((1, hidden_dim), dtype),
        "beta": jnp.zeros((1, hidden_dim), dtype),
    }


def _reference(enc, dec, p, num_heads, d_k, d_v, eps=1e-5):
    """Pure-JAX reference of the same forward pass (for a sanity check)."""
    q = dec @ p["wq"] + p["bq"][0]
    k = enc @ p["wk"] + p["bk"][0]
    v = enc @ p["wv"] + p["bv"][0]
    B, Td, _ = dec.shape
    Te = enc.shape[1]
    qh = q.reshape(B, Td, num_heads, d_k).transpose(0, 2, 1, 3)
    kh = k.reshape(B, Te, num_heads, d_k).transpose(0, 2, 1, 3)
    vh = v.reshape(B, Te, num_heads, d_v).transpose(0, 2, 1, 3)
    s = jnp.einsum("bhqd,bhkd->bhqk", qh, kh) / jnp.sqrt(jnp.float32(d_k))
    a = jax.nn.softmax(s, axis=-1)
    ctx = jnp.einsum("bhqk,bhkd->bhqd", a, vh)
    attn = ctx.transpose(0, 2, 1, 3).reshape(B, Td, num_heads * d_v)
    o = attn @ p["wo"] + p["bo"][0]
    x = dec + o
    mean = x.mean(-1, keepdims=True)
    var = ((x - mean) ** 2).mean(-1, keepdims=True)
    y = (x - mean) / jnp.sqrt(var + eps)
    return y * p["gamma"][0] + p["beta"][0]


if __name__ == "__main__":
    # Small synthetic configuration
    B, T_dec, T_enc = 2, 8, 8
    hidden_dim = 32
    num_heads = 4
    d_k = d_v = 16   # key_query_value_dim

    root = jax.random.PRNGKey(0)
    k_enc, k_dec, k_par = jax.random.split(root, 3)

    encoder_outputs = jax.random.normal(k_enc, (B, T_enc, hidden_dim), jnp.float32)
    decoder_hidden = jax.random.normal(k_dec, (B, T_dec, hidden_dim), jnp.float32)
    params = init_params(k_par, hidden_dim, d_k, d_v, num_heads)

    out = transformer_enc_dec_connection_block(
        encoder_outputs, decoder_hidden, params,
        num_heads=num_heads, d_k=d_k, d_v=d_v)
    jax.block_until_ready(out)
    assert out.shape == (B, T_dec, hidden_dim)

    ref = _reference(encoder_outputs, decoder_hidden, params, num_heads, d_k, d_v)
    err = float(jnp.max(jnp.abs(out - ref)))
    assert err < 1e-2, f"kernel vs reference max abs error too large: {err}"

    # Ragged sequence lengths: exercises the pad-to-tile + kv-column-mask path.
    T_dec2, T_enc2 = 10, 12
    dec2 = jax.random.normal(jax.random.PRNGKey(1), (B, T_dec2, hidden_dim), jnp.float32)
    enc2 = jax.random.normal(jax.random.PRNGKey(2), (B, T_enc2, hidden_dim), jnp.float32)
    out2 = transformer_enc_dec_connection_block(
        enc2, dec2, params, num_heads=num_heads, d_k=d_k, d_v=d_v)
    jax.block_until_ready(out2)
    assert out2.shape == (B, T_dec2, hidden_dim)
    ref2 = _reference(enc2, dec2, params, num_heads, d_k, d_v)
    err2 = float(jnp.max(jnp.abs(out2 - ref2)))
    assert err2 < 1e-2, f"ragged-case kernel vs reference max abs error too large: {err2}"

    print("KERNEL_OK")
</pallas_src>

<mosaic_0001>
module attributes {stable_mosaic.version = 11 : i64} {
  func.func @_attn_block_kernel(%arg0: i32, %arg1: i32, %arg2: i32, %arg3: memref<1x8x32xf32, #tpu.memory_space<vmem>>, %arg4: memref<1x4x8x16xf32, #tpu.memory_space<vmem>>, %arg5: memref<1x4x8x16xf32, #tpu.memory_space<vmem>>, %arg6: memref<32x64xf32, #tpu.memory_space<vmem>>, %arg7: memref<1x64xf32, #tpu.memory_space<vmem>>, %arg8: memref<64x32xf32, #tpu.memory_space<vmem>>, %arg9: memref<1x32xf32, #tpu.memory_space<vmem>>, %arg10: memref<1x32xf32, #tpu.memory_space<vmem>>, %arg11: memref<1x32xf32, #tpu.memory_space<vmem>>, %arg12: memref<1x8x32xf32, #tpu.memory_space<vmem>>, %arg13: memref<4x8x16xf32, #tpu.memory_space<vmem>>, %arg14: memref<4x8x1xf32, #tpu.memory_space<vmem>>, %arg15: memref<4x8x1xf32, #tpu.memory_space<vmem>>, %arg16: memref<4x8x16xf32, #tpu.memory_space<vmem>>) attributes {dimension_semantics = [#tpu.dimension_semantics<parallel>, #tpu.dimension_semantics<parallel>, #tpu.dimension_semantics<arbitrary>], iteration_bounds = array<i64: 2, 1, 1>, scalar_prefetch = 0 : i64, scratch_operands = 4 : i64, tpu.core_type = #tpu.core_type<tc>, window_params = [{transform_indices = @transform_0, window_bounds = array<i64: 1, 8, 32>}, {transform_indices = @transform_1, window_bounds = array<i64: 1, 4, 8, 16>}, {transform_indices = @transform_2, window_bounds = array<i64: 1, 4, 8, 16>}, {pipeline_mode = #tpu.pipeline_mode<synchronous>, transform_indices = @transform_3, window_bounds = array<i64: 32, 64>}, {pipeline_mode = #tpu.pipeline_mode<synchronous>, transform_indices = @transform_4, window_bounds = array<i64: 1, 64>}, {pipeline_mode = #tpu.pipeline_mode<synchronous>, transform_indices = @transform_5, window_bounds = array<i64: 64, 32>}, {pipeline_mode = #tpu.pipeline_mode<synchronous>, transform_indices = @transform_6, window_bounds = array<i64: 1, 32>}, {pipeline_mode = #tpu.pipeline_mode<synchronous>, transform_indices = @transform_7, window_bounds = array<i64: 1, 32>}, {pipeline_mode = #tpu.pipeline_mode<synchronous>, transform_indices = @transform_8, window_bounds = array<i64: 1, 32>}, {transform_indices = @transform_9, window_bounds = array<i64: 1, 8, 32>}]} {
    %c0_i32 = arith.constant 0 : i32
    %0 = arith.cmpi eq, %arg2, %c0_i32 : i32
    %1 = arith.extui %0 : i1 to i32
    %c0_i32_0 = arith.constant 0 : i32
    %2 = arith.cmpi ne, %1, %c0_i32_0 : i32
    scf.if %2 {
      %c0_35 = arith.constant 0 : index
      %c0_36 = arith.constant 0 : index
      %c0_37 = arith.constant 0 : index
      %36 = vector.load %arg3[%c0_35, %c0_36, %c0_37] : memref<1x8x32xf32, #tpu.memory_space<vmem>>, vector<1x8x32xf32>
      %37 = vector.shape_cast %36 : vector<1x8x32xf32> to vector<8x32xf32>
      %c0_38 = arith.constant 0 : index
      %c0_39 = arith.constant 0 : index
      %38 = vector.load %arg6[%c0_38, %c0_39] : memref<32x64xf32, #tpu.memory_space<vmem>>, vector<32x64xf32>
      %cst_40 = arith.constant dense<0.000000e+00> : vector<8x64xf32>
      %39 = tpu.matmul %37, %38, %cst_40 {dimension_numbers = #tpu.dot_dimension_numbers<[1], [0], [0], [1], [0, 0, 1, 1], [], []>} : vector<8x32xf32>, vector<32x64xf32>, vector<8x64xf32> -> vector<8x64xf32>
      %c0_41 = arith.constant 0 : index
      %c0_42 = arith.constant 0 : index
      %40 = vector.load %arg7[%c0_41, %c0_42] : memref<1x64xf32, #tpu.memory_space<vmem>>, vector<1x64xf32>
      %41 = vector.broadcast %40 : vector<1x64xf32> to vector<8x64xf32>
      %42 = arith.addf %39, %41 : vector<8x64xf32>
      %43 = vector.shape_cast %42 : vector<8x64xf32> to vector<8x4x16xf32>
      %44 = tpu.transpose %43, [1, 0, 2] : vector<8x4x16xf32> -> vector<4x8x16xf32>
      %c0_43 = arith.constant 0 : index
      %c0_44 = arith.constant 0 : index
      %c0_45 = arith.constant 0 : index
      %45 = vector.load %arg13[%c0_43, %c0_44, %c0_45] : memref<4x8x16xf32, #tpu.memory_space<vmem>>, vector<4x8x16xf32>
      tpu.vector_store %arg13[%c0_43, %c0_44, %c0_45], %44 {strides = array<i32>} : memref<4x8x16xf32, #tpu.memory_space<vmem>>, vector<4x8x16xf32>,
      %cst_46 = arith.constant -2.38197633E+38 : f32
      %46 = vector.broadcast %cst_46 : f32 to vector<4x8x1xf32>
      %c0_47 = arith.constant 0 : index
      %c0_48 = arith.constant 0 : index
      %c0_49 = arith.constant 0 : index
      %47 = vector.load %arg14[%c0_47, %c0_48, %c0_49] : memref<4x8x1xf32, #tpu.memory_space<vmem>>, vector<4x8x1xf32>
      tpu.vector_store %arg14[%c0_47, %c0_48, %c0_49], %46 {strides = array<i32>} : memref<4x8x1xf32, #tpu.memory_space<vmem>>, vector<4x8x1xf32>,
      %cst_50 = arith.constant 0.000000e+00 : f32
      %48 = vector.broadcast %cst_50 : f32 to vector<4x8x1xf32>
      %c0_51 = arith.constant 0 : index
      %c0_52 = arith.constant 0 : index
      %c0_53 = arith.constant 0 : index
      %49 = vector.load %arg15[%c0_51, %c0_52, %c0_53] : memref<4x8x1xf32, #tpu.memory_space<vmem>>, vector<4x8x1xf32>
      tpu.vector_store %arg15[%c0_51, %c0_52, %c0_53], %48 {strides = array<i32>} : memref<4x8x1xf32, #tpu.memory_space<vmem>>, vector<4x8x1xf32>,
      %cst_54 = arith.constant 0.000000e+00 : f32
      %50 = vector.broadcast %cst_54 : f32 to vector<4x8x16xf32>
      %c0_55 = arith.constant 0 : index
      %c0_56 = arith.constant 0 : index
      %c0_57 = arith.constant 0 : index
      %51 = vector.load %arg16[%c0_55, %c0_56, %c0_57] : memref<4x8x16xf32, #tpu.memory_space<vmem>>, vector<4x8x16xf32>
      tpu.vector_store %arg16[%c0_55, %c0_56, %c0_57], %50 {strides = array<i32>} : memref<4x8x16xf32, #tpu.memory_space<vmem>>, vector<4x8x16xf32>,
    } else {
    }
    %c0 = arith.constant 0 : index
    %c0_1 = arith.constant 0 : index
    %c0_2 = arith.constant 0 : index
    %c0_3 = arith.constant 0 : index
    %3 = vector.load %arg4[%c0, %c0_1, %c0_2, %c0_3] : memref<1x4x8x16xf32, #tpu.memory_space<vmem>>, vector<1x4x8x16xf32>
    %4 = vector.shape_cast %3 : vector<1x4x8x16xf32> to vector<4x8x16xf32>
    %c0_4 = arith.constant 0 : index
    %c0_5 = arith.constant 0 : index
    %c0_6 = arith.constant 0 : index
    %c0_7 = arith.constant 0 : index
    %5 = vector.load %arg5[%c0_4, %c0_5, %c0_6, %c0_7] : memref<1x4x8x16xf32, #tpu.memory_space<vmem>>, vector<1x4x8x16xf32>
    %6 = vector.shape_cast %5 : vector<1x4x8x16xf32> to vector<4x8x16xf32>
    %c0_8 = arith.constant 0 : index
    %c0_9 = arith.constant 0 : index
    %c0_10 = arith.constant 0 : index
    %7 = vector.load %arg13[%c0_8, %c0_9, %c0_10] : memref<4x8x16xf32, #tpu.memory_space<vmem>>, vector<4x8x16xf32>
    "tpu.trace_start"() <{level = 10 : i32, message = "hqd,hkd->hqk"}> : () -> ()
    %cst = arith.constant dense<0.000000e+00> : vector<4x8x8xf32>
    %8 = tpu.matmul %7, %4, %cst {dimension_numbers = #tpu.dot_dimension_numbers<[2], [2], [1], [1], [0, 0, 0, 1, 1, 1], [0], [0]>} : vector<4x8x16xf32>, vector<4x8x16xf32>, vector<4x8x8xf32> -> vector<4x8x8xf32>
    "tpu.trace_stop"() : () -> ()
    %cst_11 = arith.constant 2.500000e-01 : f32
    %9 = vector.broadcast %cst_11 : f32 to vector<4x8x8xf32>
    %10 = arith.mulf %8, %9 : vector<4x8x8xf32>
    %c0_12 = arith.constant 0 : index
    %c0_13 = arith.constant 0 : index
    %c0_14 = arith.constant 0 : index
    %11 = vector.load %arg14[%c0_12, %c0_13, %c0_14] : memref<4x8x1xf32, #tpu.memory_space<vmem>>, vector<4x8x1xf32>
    %cst_15 = arith.constant dense<0xFF800000> : vector<4x8xf32>
    %12 = vector.multi_reduction <maximumf>, %10, %cst_15 [2] : vector<4x8x8xf32> to vector<4x8xf32>
    %13 = vector.shape_cast %12 : vector<4x8xf32> to vector<4x8x1xf32>
    %14 = arith.maximumf %11, %13 : vector<4x8x1xf32>
    %15 = arith.subf %11, %14 : vector<4x8x1xf32>
    %16 = math.exp %15 : vector<4x8x1xf32>
    %17 = vector.broadcast %14 : vector<4x8x1xf32> to vector<4x8x8xf32>
    %18 = arith.subf %10, %17 : vector<4x8x8xf32>
    %19 = math.exp %18 : vector<4x8x8xf32>
    %c0_16 = arith.constant 0 : index
    %c0_17 = arith.constant 0 : index
    %c0_18 = arith.constant 0 : index
    %20 = vector.load %arg15[%c0_16, %c0_17, %c0_18] : memref<4x8x1xf32, #tpu.memory_space<vmem>>, vector<4x8x1xf32>
    %21 = arith.mulf %16, %20 : vector<4x8x1xf32>
    %cst_19 = arith.constant dense<0.000000e+00> : vector<4x8xf32>
    %22 = vector.multi_reduction <add>, %19, %cst_19 [2] : vector<4x8x8xf32> to vector<4x8xf32>
    %23 = vector.shape_cast %22 : vector<4x8xf32> to vector<4x8x1xf32>
    %24 = arith.addf %21, %23 : vector<4x8x1xf32>
    %c0_20 = arith.constant 0 : index
    %c0_21 = arith.constant 0 : index
    %c0_22 = arith.constant 0 : index
    %25 = vector.load %arg15[%c0_20, %c0_21, %c0_22] : memref<4x8x1xf32, #tpu.memory_space<vmem>>, vector<4x8x1xf32>
    tpu.vector_store %arg15[%c0_20, %c0_21, %c0_22], %24 {strides = array<i32>} : memref<4x8x1xf32, #tpu.memory_space<vmem>>, vector<4x8x1xf32>,
    %c0_23 = arith.constant 0 : index
    %c0_24 = arith.constant 0 : index
    %c0_25 = arith.constant 0 : index
    %26 = vector.load %arg16[%c0_23, %c0_24, %c0_25] : memref<4x8x16xf32, #tpu.memory_space<vmem>>, vector<4x8x16xf32>
    %27 = vector.broadcast %16 : vector<4x8x1xf32> to vector<4x8x16xf32>
    %28 = arith.mulf %27, %26 : vector<4x8x16xf32>
    "tpu.trace_start"() <{level = 10 : i32, message = "hqk,hkd->hqd"}> : () -> ()
    %cst_26 = arith.constant dense<0.000000e+00> : vector<4x8x16xf32>
    %29 = tpu.matmul %19, %6, %cst_26 {dimension_numbers = #tpu.dot_dimension_numbers<[2], [1], [1], [2], [0, 0, 0, 1, 1, 2], [0], [0]>} : vector<4x8x8xf32>, vector<4x8x16xf32>, vector<4x8x16xf32> -> vector<4x8x16xf32>
    "tpu.trace_stop"() : () -> ()
    %30 = arith.addf %28, %29 : vector<4x8x16xf32>
    %c0_27 = arith.constant 0 : index
    %c0_28 = arith.constant 0 : index
    %c0_29 = arith.constant 0 : index
    %31 = vector.load %arg16[%c0_27, %c0_28, %c0_29] : memref<4x8x16xf32, #tpu.memory_space<vmem>>, vector<4x8x16xf32>
    tpu.vector_store %arg16[%c0_27, %c0_28, %c0_29], %30 {strides = array<i32>} : memref<4x8x16xf32, #tpu.memory_space<vmem>>, vector<4x8x16xf32>,
    %c0_30 = arith.constant 0 : index
    %c0_31 = arith.constant 0 : index
    %c0_32 = arith.constant 0 : index
    %32 = vector.load %arg14[%c0_30, %c0_31, %c0_32] : memref<4x8x1xf32, #tpu.memory_space<vmem>>, vector<4x8x1xf32>
    tpu.vector_store %arg14[%c0_30, %c0_31, %c0_32], %14 {strides = array<i32>} : memref<4x8x1xf32, #tpu.memory_space<vmem>>, vector<4x8x1xf32>,
    %c0_i32_33 = arith.constant 0 : i32
    %33 = arith.cmpi eq, %arg2, %c0_i32_33 : i32
    %34 = arith.extui %33 : i1 to i32
    %c0_i32_34 = arith.constant 0 : i32
    %35 = arith.cmpi ne, %34, %c0_i32_34 : i32
    scf.if %35 {
      %c0_35 = arith.constant 0 : index
      %c0_36 = arith.constant 0 : index
      %c0_37 = arith.constant 0 : index
      %36 = vector.load %arg16[%c0_35, %c0_36, %c0_37] : memref<4x8x16xf32, #tpu.memory_space<vmem>>, vector<4x8x16xf32>
      %c0_38 = arith.constant 0 : index
      %c0_39 = arith.constant 0 : index
      %c0_40 = arith.constant 0 : index
      %37 = vector.load %arg15[%c0_38, %c0_39, %c0_40] : memref<4x8x1xf32, #tpu.memory_space<vmem>>, vector<4x8x1xf32>
      %38 = tpu.reciprocal %37 : vector<4x8x1xf32> -> vector<4x8x1xf32>
      %39 = vector.broadcast %38 : vector<4x8x1xf32> to vector<4x8x16xf32>
      %40 = arith.mulf %36, %39 : vector<4x8x16xf32>
      %41 = tpu.transpose %40, [1, 0, 2] : vector<4x8x16xf32> -> vector<8x4x16xf32>
      %42 = vector.shape_cast %41 : vector<8x4x16xf32> to vector<8x64xf32>
      %c0_41 = arith.constant 0 : index
      %c0_42 = arith.constant 0 : index
      %43 = vector.load %arg8[%c0_41, %c0_42] : memref<64x32xf32, #tpu.memory_space<vmem>>, vector<64x32xf32>
      %cst_43 = arith.constant dense<0.000000e+00> : vector<8x32xf32>
      %44 = tpu.matmul %42, %43, %cst_43 {dimension_numbers = #tpu.dot_dimension_numbers<[1], [0], [0], [1], [0, 0, 1, 1], [], []>} : vector<8x64xf32>, vector<64x32xf32>, vector<8x32xf32> -> vector<8x32xf32>
      %c0_44 = arith.constant 0 : index
      %c0_45 = arith.constant 0 : index
      %45 = vector.load %arg9[%c0_44, %c0_45] : memref<1x32xf32, #tpu.memory_space<vmem>>, vector<1x32xf32>
      %46 = vector.broadcast %45 : vector<1x32xf32> to vector<8x32xf32>
      %47 = arith.addf %44, %46 : vector<8x32xf32>
      %c0_46 = arith.constant 0 : index
      %c0_47 = arith.constant 0 : index
      %c0_48 = arith.constant 0 : index
      %48 = vector.load %arg3[%c0_46, %c0_47, %c0_48] : memref<1x8x32xf32, #tpu.memory_space<vmem>>, vector<1x8x32xf32>
      %49 = vector.shape_cast %48 : vector<1x8x32xf32> to vector<8x32xf32>
      %50 = arith.addf %49, %47 : vector<8x32xf32>
      %cst_49 = arith.constant dense<0.000000e+00> : vector<8xf32>
      %51 = vector.multi_reduction <add>, %50, %cst_49 [1] : vector<8x32xf32> to vector<8xf32>
      %52 = vector.shape_cast %51 : vector<8xf32> to vector<8x1xf32>
      %cst_50 = arith.constant 3.200000e+01 : f32
      %53 = vector.broadcast %cst_50 : f32 to vector<8x1xf32>
      %54 = arith.divf %52, %53 : vector<8x1xf32>
      %55 = vector.broadcast %54 : vector<8x1xf32> to vector<8x32xf32>
      %56 = arith.subf %50, %55 : vector<8x32xf32>
      %57 = arith.mulf %56, %56 : vector<8x32xf32>
      %cst_51 = arith.constant dense<0.000000e+00> : vector<8xf32>
      %58 = vector.multi_reduction <add>, %57, %cst_51 [1] : vector<8x32xf32> to vector<8xf32>
      %59 = vector.shape_cast %58 : vector<8xf32> to vector<8x1xf32>
      %cst_52 = arith.constant 3.200000e+01 : f32
      %60 = vector.broadcast %cst_52 : f32 to vector<8x1xf32>
      %61 = arith.divf %59, %60 : vector<8x1xf32>
      %cst_53 = arith.constant 9.99999974E-6 : f32
      %62 = vector.broadcast %cst_53 : f32 to vector<8x1xf32>
      %63 = arith.addf %61, %62 : vector<8x1xf32>
      %64 = math.rsqrt %63 : vector<8x1xf32>
      %65 = vector.broadcast %64 : vector<8x1xf32> to vector<8x32xf32>
      %66 = arith.mulf %56, %65 : vector<8x32xf32>
      %c0_54 = arith.constant 0 : index
      %c0_55 = arith.constant 0 : index
      %67 = vector.load %arg10[%c0_54, %c0_55] : memref<1x32xf32, #tpu.memory_space<vmem>>, vector<1x32xf32>
      %68 = vector.broadcast %67 : vector<1x32xf32> to vector<8x32xf32>
      %69 = arith.mulf %66, %68 : vector<8x32xf32>
      %c0_56 = arith.constant 0 : index
      %c0_57 = arith.constant 0 : index
      %70 = vector.load %arg11[%c0_56, %c0_57] : memref<1x32xf32, #tpu.memory_space<vmem>>, vector<1x32xf32>
      %71 = vector.broadcast %70 : vector<1x32xf32> to vector<8x32xf32>
      %72 = arith.addf %69, %71 : vector<8x32xf32>
      %c0_58 = arith.constant 0 : index
      %c0_59 = arith.constant 0 : index
      %c0_60 = arith.constant 0 : index
      %73 = vector.load %arg12[%c0_58, %c0_59, %c0_60] : memref<1x8x32xf32, #tpu.memory_space<vmem>>, vector<1x8x32xf32>
      %74 = vector.shape_cast %73 : vector<1x8x32xf32> to vector<8x32xf32>
      %75 = vector.shape_cast %72 : vector<8x32xf32> to vector<1x8x32xf32>
      tpu.vector_store %arg12[%c0_58, %c0_59, %c0_60], %75 {strides = array<i32>} : memref<1x8x32xf32, #tpu.memory_space<vmem>>, vector<1x8x32xf32>,
    } else {
    }
    return
  }
  func.func @transform_0(%arg0: i32, %arg1: i32, %arg2: i32) -> (i32, i32, i32) {
    %c0_i32 = arith.constant 0 : i32
    %c0_i32_0 = arith.constant 0 : i32
    return %arg0, %arg1, %c0_i32 : i32, i32, i32
  }
  func.func @transform_1(%arg0: i32, %arg1: i32, %arg2: i32) -> (i32, i32, i32, i32) {
    %c0_i32 = arith.constant 0 : i32
    %c0_i32_0 = arith.constant 0 : i32
    %c0_i32_1 = arith.constant 0 : i32
    return %arg0, %c0_i32, %arg2, %c0_i32_0 : i32, i32, i32, i32
  }
  func.func @transform_2(%arg0: i32, %arg1: i32, %arg2: i32) -> (i32, i32, i32, i32) {
    %c0_i32 = arith.constant 0 : i32
    %c0_i32_0 = arith.constant 0 : i32
    %c0_i32_1 = arith.constant 0 : i32
    return %arg0, %c0_i32, %arg2, %c0_i32_0 : i32, i32, i32, i32
  }
  func.func @transform_3(%arg0: i32, %arg1: i32, %arg2: i32) -> (i32, i32) {
    %c0_i32 = arith.constant 0 : i32
    %c0_i32_0 = arith.constant 0 : i32
    %c0_i32_1 = arith.constant 0 : i32
    return %c0_i32, %c0_i32_0 : i32, i32
  }
  func.func @transform_4(%arg0: i32, %arg1: i32, %arg2: i32) -> (i32, i32) {
    %c0_i32 = arith.constant 0 : i32
    %c0_i32_0 = arith.constant 0 : i32
    %c0_i32_1 = arith.constant 0 : i32
    return %c0_i32, %c0_i32_0 : i32, i32
  }
  func.func @transform_5(%arg0: i32, %arg1: i32, %arg2: i32) -> (i32, i32) {
    %c0_i32 = arith.constant 0 : i32
    %c0_i32_0 = arith.constant 0 : i32
    %c0_i32_1 = arith.constant 0 : i32
    return %c0_i32, %c0_i32_0 : i32, i32
  }
  func.func @transform_6(%arg0: i32, %arg1: i32, %arg2: i32) -> (i32, i32) {
    %c0_i32 = arith.constant 0 : i32
    %c0_i32_0 = arith.constant 0 : i32
    %c0_i32_1 = arith.constant 0 : i32
    return %c0_i32, %c0_i32_0 : i32, i32
  }
  func.func @transform_7(%arg0: i32, %arg1: i32, %arg2: i32) -> (i32, i32) {
    %c0_i32 = arith.constant 0 : i32
    %c0_i32_0 = arith.constant 0 : i32
    %c0_i32_1 = arith.constant 0 : i32
    return %c0_i32, %c0_i32_0 : i32, i32
  }
  func.func @transform_8(%arg0: i32, %arg1: i32, %arg2: i32) -> (i32, i32) {
    %c0_i32 = arith.constant 0 : i32
    %c0_i32_0 = arith.constant 0 : i32
    %c0_i32_1 = arith.constant 0 : i32
    return %c0_i32, %c0_i32_0 : i32, i32
  }
  func.func @transform_9(%arg0: i32, %arg1: i32, %arg2: i32) -> (i32, i32, i32) {
    %c0_i32 = arith.constant 0 : i32
    %c0_i32_0 = arith.constant 0 : i32
    return %arg0, %arg1, %c0_i32 : i32, i32, i32
  }
}

module attributes {stable_mosaic.version = 11 : i64} {
  func.func @_attn_block_kernel(%arg0: i32, %arg1: i32, %arg2: i32, %arg3: memref<1x8x32xf32, #tpu.memory_space<vmem>>, %arg4: memref<1x4x8x16xf32, #tpu.memory_space<vmem>>, %arg5: memref<1x4x8x16xf32, #tpu.memory_space<vmem>>, %arg6: memref<32x64xf32, #tpu.memory_space<vmem>>, %arg7: memref<1x64xf32, #tpu.memory_space<vmem>>, %arg8: memref<64x32xf32, #tpu.memory_space<vmem>>, %arg9: memref<1x32xf32, #tpu.memory_space<vmem>>, %arg10: memref<1x32xf32, #tpu.memory_space<vmem>>, %arg11: memref<1x32xf32, #tpu.memory_space<vmem>>, %arg12: memref<1x8x32xf32, #tpu.memory_space<vmem>>, %arg13: memref<4x8x16xf32, #tpu.memory_space<vmem>>, %arg14: memref<4x8x1xf32, #tpu.memory_space<vmem>>, %arg15: memref<4x8x1xf32, #tpu.memory_space<vmem>>, %arg16: memref<4x8x16xf32, #tpu.memory_space<vmem>>) attributes {dimension_semantics = [#tpu.dimension_semantics<parallel>, #tpu.dimension_semantics<parallel>, #tpu.dimension_semantics<arbitrary>], iteration_bounds = array<i64: 2, 1, 1>, scalar_prefetch = 0 : i64, scratch_operands = 4 : i64, tpu.core_type = #tpu.core_type<tc>, window_params = [{transform_indices = @transform_0, window_bounds = array<i64: 1, 8, 32>}, {transform_indices = @transform_1, window_bounds = array<i64: 1, 4, 8, 16>}, {transform_indices = @transform_2, window_bounds = array<i64: 1, 4, 8, 16>}, {pipeline_mode = #tpu.pipeline_mode<synchronous>, transform_indices = @transform_3, window_bounds = array<i64: 32, 64>}, {pipeline_mode = #tpu.pipeline_mode<synchronous>, transform_indices = @transform_4, window_bounds = array<i64: 1, 64>}, {pipeline_mode = #tpu.pipeline_mode<synchronous>, transform_indices = @transform_5, window_bounds = array<i64: 64, 32>}, {pipeline_mode = #tpu.pipeline_mode<synchronous>, transform_indices = @transform_6, window_bounds = array<i64: 1, 32>}, {pipeline_mode = #tpu.pipeline_mode<synchronous>, transform_indices = @transform_7, window_bounds = array<i64: 1, 32>}, {pipeline_mode = #tpu.pipeline_mode<synchronous>, transform_indices = @transform_8, window_bounds = array<i64: 1, 32>}, {transform_indices = @transform_9, window_bounds = array<i64: 1, 8, 32>}]} {
    %c0_i32 = arith.constant 0 : i32
    %0 = arith.cmpi eq, %arg2, %c0_i32 : i32
    %1 = arith.extui %0 : i1 to i32
    %c0_i32_0 = arith.constant 0 : i32
    %2 = arith.cmpi ne, %1, %c0_i32_0 : i32
    scf.if %2 {
      %c0_35 = arith.constant 0 : index
      %c0_36 = arith.constant 0 : index
      %c0_37 = arith.constant 0 : index
      %36 = vector.load %arg3[%c0_35, %c0_36, %c0_37] : memref<1x8x32xf32, #tpu.memory_space<vmem>>, vector<1x8x32xf32>
      %37 = vector.shape_cast %36 : vector<1x8x32xf32> to vector<8x32xf32>
      %c0_38 = arith.constant 0 : index
      %c0_39 = arith.constant 0 : index
      %38 = vector.load %arg6[%c0_38, %c0_39] : memref<32x64xf32, #tpu.memory_space<vmem>>, vector<32x64xf32>
      %cst_40 = arith.constant dense<0.000000e+00> : vector<8x64xf32>
      %39 = tpu.matmul %37, %38, %cst_40 {dimension_numbers = #tpu.dot_dimension_numbers<[1], [0], [0], [1], [0, 0, 1, 1], [], []>} : vector<8x32xf32>, vector<32x64xf32>, vector<8x64xf32> -> vector<8x64xf32>
      %c0_41 = arith.constant 0 : index
      %c0_42 = arith.constant 0 : index
      %40 = vector.load %arg7[%c0_41, %c0_42] : memref<1x64xf32, #tpu.memory_space<vmem>>, vector<1x64xf32>
      %41 = vector.broadcast %40 : vector<1x64xf32> to vector<8x64xf32>
      %42 = arith.addf %39, %41 : vector<8x64xf32>
      %43 = vector.shape_cast %42 : vector<8x64xf32> to vector<8x4x16xf32>
      %44 = tpu.transpose %43, [1, 0, 2] : vector<8x4x16xf32> -> vector<4x8x16xf32>
      %c0_43 = arith.constant 0 : index
      %c0_44 = arith.constant 0 : index
      %c0_45 = arith.constant 0 : index
      %45 = vector.load %arg13[%c0_43, %c0_44, %c0_45] : memref<4x8x16xf32, #tpu.memory_space<vmem>>, vector<4x8x16xf32>
      tpu.vector_store %arg13[%c0_43, %c0_44, %c0_45], %44 {strides = array<i32>} : memref<4x8x16xf32, #tpu.memory_space<vmem>>, vector<4x8x16xf32>,
      %cst_46 = arith.constant -2.38197633E+38 : f32
      %46 = vector.broadcast %cst_46 : f32 to vector<4x8x1xf32>
      %c0_47 = arith.constant 0 : index
      %c0_48 = arith.constant 0 : index
      %c0_49 = arith.constant 0 : index
      %47 = vector.load %arg14[%c0_47, %c0_48, %c0_49] : memref<4x8x1xf32, #tpu.memory_space<vmem>>, vector<4x8x1xf32>
      tpu.vector_store %arg14[%c0_47, %c0_48, %c0_49], %46 {strides = array<i32>} : memref<4x8x1xf32, #tpu.memory_space<vmem>>, vector<4x8x1xf32>,
      %cst_50 = arith.constant 0.000000e+00 : f32
      %48 = vector.broadcast %cst_50 : f32 to vector<4x8x1xf32>
      %c0_51 = arith.constant 0 : index
      %c0_52 = arith.constant 0 : index
      %c0_53 = arith.constant 0 : index
      %49 = vector.load %arg15[%c0_51, %c0_52, %c0_53] : memref<4x8x1xf32, #tpu.memory_space<vmem>>, vector<4x8x1xf32>
      tpu.vector_store %arg15[%c0_51, %c0_52, %c0_53], %48 {strides = array<i32>} : memref<4x8x1xf32, #tpu.memory_space<vmem>>, vector<4x8x1xf32>,
      %cst_54 = arith.constant 0.000000e+00 : f32
      %50 = vector.broadcast %cst_54 : f32 to vector<4x8x16xf32>
      %c0_55 = arith.constant 0 : index
      %c0_56 = arith.constant 0 : index
      %c0_57 = arith.constant 0 : index
      %51 = vector.load %arg16[%c0_55, %c0_56, %c0_57] : memref<4x8x16xf32, #tpu.memory_space<vmem>>, vector<4x8x16xf32>
      tpu.vector_store %arg16[%c0_55, %c0_56, %c0_57], %50 {strides = array<i32>} : memref<4x8x16xf32, #tpu.memory_space<vmem>>, vector<4x8x16xf32>,
    } else {
    }
    %c0 = arith.constant 0 : index
    %c0_1 = arith.constant 0 : index
    %c0_2 = arith.constant 0 : index
    %c0_3 = arith.constant 0 : index
    %3 = vector.load %arg4[%c0, %c0_1, %c0_2, %c0_3] : memref<1x4x8x16xf32, #tpu.memory_space<vmem>>, vector<1x4x8x16xf32>
    %4 = vector.shape_cast %3 : vector<1x4x8x16xf32> to vector<4x8x16xf32>
    %c0_4 = arith.constant 0 : index
    %c0_5 = arith.constant 0 : index
    %c0_6 = arith.constant 0 : index
    %c0_7 = arith.constant 0 : index
    %5 = vector.load %arg5[%c0_4, %c0_5, %c0_6, %c0_7] : memref<1x4x8x16xf32, #tpu.memory_space<vmem>>, vector<1x4x8x16xf32>
    %6 = vector.shape_cast %5 : vector<1x4x8x16xf32> to vector<4x8x16xf32>
    %c0_8 = arith.constant 0 : index
    %c0_9 = arith.constant 0 : index
    %c0_10 = arith.constant 0 : index
    %7 = vector.load %arg13[%c0_8, %c0_9, %c0_10] : memref<4x8x16xf32, #tpu.memory_space<vmem>>, vector<4x8x16xf32>
    "tpu.trace_start"() <{level = 10 : i32, message = "hqd,hkd->hqk"}> : () -> ()
    %cst = arith.constant dense<0.000000e+00> : vector<4x8x8xf32>
    %8 = tpu.matmul %7, %4, %cst {dimension_numbers = #tpu.dot_dimension_numbers<[2], [2], [1], [1], [0, 0, 0, 1, 1, 1], [0], [0]>} : vector<4x8x16xf32>, vector<4x8x16xf32>, vector<4x8x8xf32> -> vector<4x8x8xf32>
    "tpu.trace_stop"() : () -> ()
    %cst_11 = arith.constant 2.500000e-01 : f32
    %9 = vector.broadcast %cst_11 : f32 to vector<4x8x8xf32>
    %10 = arith.mulf %8, %9 : vector<4x8x8xf32>
    %c0_12 = arith.constant 0 : index
    %c0_13 = arith.constant 0 : index
    %c0_14 = arith.constant 0 : index
    %11 = vector.load %arg14[%c0_12, %c0_13, %c0_14] : memref<4x8x1xf32, #tpu.memory_space<vmem>>, vector<4x8x1xf32>
    %cst_15 = arith.constant dense<0xFF800000> : vector<4x8xf32>
    %12 = vector.multi_reduction <maximumf>, %10, %cst_15 [2] : vector<4x8x8xf32> to vector<4x8xf32>
    %13 = vector.shape_cast %12 : vector<4x8xf32> to vector<4x8x1xf32>
    %14 = arith.maximumf %11, %13 : vector<4x8x1xf32>
    %15 = arith.subf %11, %14 : vector<4x8x1xf32>
    %16 = math.exp %15 : vector<4x8x1xf32>
    %17 = vector.broadcast %14 : vector<4x8x1xf32> to vector<4x8x8xf32>
    %18 = arith.subf %10, %17 : vector<4x8x8xf32>
    %19 = math.exp %18 : vector<4x8x8xf32>
    %c0_16 = arith.constant 0 : index
    %c0_17 = arith.constant 0 : index
    %c0_18 = arith.constant 0 : index
    %20 = vector.load %arg15[%c0_16, %c0_17, %c0_18] : memref<4x8x1xf32, #tpu.memory_space<vmem>>, vector<4x8x1xf32>
    %21 = arith.mulf %16, %20 : vector<4x8x1xf32>
    %cst_19 = arith.constant dense<0.000000e+00> : vector<4x8xf32>
    %22 = vector.multi_reduction <add>, %19, %cst_19 [2] : vector<4x8x8xf32> to vector<4x8xf32>
    %23 = vector.shape_cast %22 : vector<4x8xf32> to vector<4x8x1xf32>
    %24 = arith.addf %21, %23 : vector<4x8x1xf32>
    %c0_20 = arith.constant 0 : index
    %c0_21 = arith.constant 0 : index
    %c0_22 = arith.constant 0 : index
    %25 = vector.load %arg15[%c0_20, %c0_21, %c0_22] : memref<4x8x1xf32, #tpu.memory_space<vmem>>, vector<4x8x1xf32>
    tpu.vector_store %arg15[%c0_20, %c0_21, %c0_22], %24 {strides = array<i32>} : memref<4x8x1xf32, #tpu.memory_space<vmem>>, vector<4x8x1xf32>,
    %c0_23 = arith.constant 0 : index
    %c0_24 = arith.constant 0 : index
    %c0_25 = arith.constant 0 : index
    %26 = vector.load %arg16[%c0_23, %c0_24, %c0_25] : memref<4x8x16xf32, #tpu.memory_space<vmem>>, vector<4x8x16xf32>
    %27 = vector.broadcast %16 : vector<4x8x1xf32> to vector<4x8x16xf32>
    %28 = arith.mulf %27, %26 : vector<4x8x16xf32>
    "tpu.trace_start"() <{level = 10 : i32, message = "hqk,hkd->hqd"}> : () -> ()
    %cst_26 = arith.constant dense<0.000000e+00> : vector<4x8x16xf32>
    %29 = tpu.matmul %19, %6, %cst_26 {dimension_numbers = #tpu.dot_dimension_numbers<[2], [1], [1], [2], [0, 0, 0, 1, 1, 2], [0], [0]>} : vector<4x8x8xf32>, vector<4x8x16xf32>, vector<4x8x16xf32> -> vector<4x8x16xf32>
    "tpu.trace_stop"() : () -> ()
    %30 = arith.addf %28, %29 : vector<4x8x16xf32>
    %c0_27 = arith.constant 0 : index
    %c0_28 = arith.constant 0 : index
    %c0_29 = arith.constant 0 : index
    %31 = vector.load %arg16[%c0_27, %c0_28, %c0_29] : memref<4x8x16xf32, #tpu.memory_space<vmem>>, vector<4x8x16xf32>
    tpu.vector_store %arg16[%c0_27, %c0_28, %c0_29], %30 {strides = array<i32>} : memref<4x8x16xf32, #tpu.memory_space<vmem>>, vector<4x8x16xf32>,
    %c0_30 = arith.constant 0 : index
    %c0_31 = arith.constant 0 : index
    %c0_32 = arith.constant 0 : index
    %32 = vector.load %arg14[%c0_30, %c0_31, %c0_32] : memref<4x8x1xf32, #tpu.memory_space<vmem>>, vector<4x8x1xf32>
    tpu.vector_store %arg14[%c0_30, %c0_31, %c0_32], %14 {strides = array<i32>} : memref<4x8x1xf32, #tpu.memory_space<vmem>>, vector<4x8x1xf32>,
    %c0_i32_33 = arith.constant 0 : i32
    %33 = arith.cmpi eq, %arg2, %c0_i32_33 : i32
    %34 = arith.extui %33 : i1 to i32
    %c0_i32_34 = arith.constant 0 : i32
    %35 = arith.cmpi ne, %34, %c0_i32_34 : i32
    scf.if %35 {
      %c0_35 = arith.constant 0 : index
      %c0_36 = arith.constant 0 : index
      %c0_37 = arith.constant 0 : index
      %36 = vector.load %arg16[%c0_35, %c0_36, %c0_37] : memref<4x8x16xf32, #tpu.memory_space<vmem>>, vector<4x8x16xf32>
      %c0_38 = arith.constant 0 : index
      %c0_39 = arith.constant 0 : index
      %c0_40 = arith.constant 0 : index
      %37 = vector.load %arg15[%c0_38, %c0_39, %c0_40] : memref<4x8x1xf32, #tpu.memory_space<vmem>>, vector<4x8x1xf32>
      %38 = tpu.reciprocal %37 : vector<4x8x1xf32> -> vector<4x8x1xf32>
      %39 = vector.broadcast %38 : vector<4x8x1xf32> to vector<4x8x16xf32>
      %40 = arith.mulf %36, %39 : vector<4x8x16xf32>
      %41 = tpu.transpose %40, [1, 0, 2] : vector<4x8x16xf32> -> vector<8x4x16xf32>
      %42 = vector.shape_cast %41 : vector<8x4x16xf32> to vector<8x64xf32>
      %c0_41 = arith.constant 0 : index
      %c0_42 = arith.constant 0 : index
      %43 = vector.load %arg8[%c0_41, %c0_42] : memref<64x32xf32, #tpu.memory_space<vmem>>, vector<64x32xf32>
      %cst_43 = arith.constant dense<0.000000e+00> : vector<8x32xf32>
      %44 = tpu.matmul %42, %43, %cst_43 {dimension_numbers = #tpu.dot_dimension_numbers<[1], [0], [0], [1], [0, 0, 1, 1], [], []>} : vector<8x64xf32>, vector<64x32xf32>, vector<8x32xf32> -> vector<8x32xf32>
      %c0_44 = arith.constant 0 : index
      %c0_45 = arith.constant 0 : index
      %45 = vector.load %arg9[%c0_44, %c0_45] : memref<1x32xf32, #tpu.memory_space<vmem>>, vector<1x32xf32>
      %46 = vector.broadcast %45 : vector<1x32xf32> to vector<8x32xf32>
      %47 = arith.addf %44, %46 : vector<8x32xf32>
      %c0_46 = arith.constant 0 : index
      %c0_47 = arith.constant 0 : index
      %c0_48 = arith.constant 0 : index
      %48 = vector.load %arg3[%c0_46, %c0_47, %c0_48] : memref<1x8x32xf32, #tpu.memory_space<vmem>>, vector<1x8x32xf32>
      %49 = vector.shape_cast %48 : vector<1x8x32xf32> to vector<8x32xf32>
      %50 = arith.addf %49, %47 : vector<8x32xf32>
      %cst_49 = arith.constant dense<0.000000e+00> : vector<8xf32>
      %51 = vector.multi_reduction <add>, %50, %cst_49 [1] : vector<8x32xf32> to vector<8xf32>
      %52 = vector.shape_cast %51 : vector<8xf32> to vector<8x1xf32>
      %cst_50 = arith.constant 3.200000e+01 : f32
      %53 = vector.broadcast %cst_50 : f32 to vector<8x1xf32>
      %54 = arith.divf %52, %53 : vector<8x1xf32>
      %55 = vector.broadcast %54 : vector<8x1xf32> to vector<8x32xf32>
      %56 = arith.subf %50, %55 : vector<8x32xf32>
      %57 = arith.mulf %56, %56 : vector<8x32xf32>
      %cst_51 = arith.constant dense<0.000000e+00> : vector<8xf32>
      %58 = vector.multi_reduction <add>, %57, %cst_51 [1] : vector<8x32xf32> to vector<8xf32>
      %59 = vector.shape_cast %58 : vector<8xf32> to vector<8x1xf32>
      %cst_52 = arith.constant 3.200000e+01 : f32
      %60 = vector.broadcast %cst_52 : f32 to vector<8x1xf32>
      %61 = arith.divf %59, %60 : vector<8x1xf32>
      %cst_53 = arith.constant 9.99999974E-6 : f32
      %62 = vector.broadcast %cst_53 : f32 to vector<8x1xf32>
      %63 = arith.addf %61, %62 : vector<8x1xf32>
      %64 = math.rsqrt %63 : vector<8x1xf32>
      %65 = vector.broadcast %64 : vector<8x1xf32> to vector<8x32xf32>
      %66 = arith.mulf %56, %65 : vector<8x32xf32>
      %c0_54 = arith.constant 0 : index
      %c0_55 = arith.constant 0 : index
      %67 = vector.load %arg10[%c0_54, %c0_55] : memref<1x32xf32, #tpu.memory_space<vmem>>, vector<1x32xf32>
      %68 = vector.broadcast %67 : vector<1x32xf32> to vector<8x32xf32>
      %69 = arith.mulf %66, %68 : vector<8x32xf32>
      %c0_56 = arith.constant 0 : index
      %c0_57 = arith.constant 0 : index
      %70 = vector.load %arg11[%c0_56, %c0_57] : memref<1x32xf32, #tpu.memory_space<vmem>>, vector<1x32xf32>
      %71 = vector.broadcast %70 : vector<1x32xf32> to vector<8x32xf32>
      %72 = arith.addf %69, %71 : vector<8x32xf32>
      %c0_58 = arith.constant 0 : index
      %c0_59 = arith.constant 0 : index
      %c0_60 = arith.constant 0 : index
      %73 = vector.load %arg12[%c0_58, %c0_59, %c0_60] : memref<1x8x32xf32, #tpu.memory_space<vmem>>, vector<1x8x32xf32>
      %74 = vector.shape_cast %73 : vector<1x8x32xf32> to vector<8x32xf32>
      %75 = vector.shape_cast %72 : vector<8x32xf32> to vector<1x8x32xf32>
      tpu.vector_store %arg12[%c0_58, %c0_59, %c0_60], %75 {strides = array<i32>} : memref<1x8x32xf32, #tpu.memory_space<vmem>>, vector<1x8x32xf32>,
    } else {
    }
    return
  }
  func.func @transform_0(%arg0: i32, %arg1: i32, %arg2: i32) -> (i32, i32, i32) {
    %c0_i32 = arith.constant 0 : i32
    %c0_i32_0 = arith.constant 0 : i32
    return %arg0, %arg1, %c0_i32 : i32, i32, i32
  }
  func.func @transform_1(%arg0: i32, %arg1: i32, %arg2: i32) -> (i32, i32, i32, i32) {
    %c0_i32 = arith.constant 0 : i32
    %c0_i32_0 = arith.constant 0 : i32
    %c0_i32_1 = arith.constant 0 : i32
    return %arg0, %c0_i32, %arg2, %c0_i32_0 : i32, i32, i32, i32
  }
  func.func @transform_2(%arg0: i32, %arg1: i32, %arg2: i32) -> (i32, i32, i32, i32) {
    %c0_i32 = arith.constant 0 : i32
    %c0_i32_0 = arith.constant 0 : i32
    %c0_i32_1 = arith.constant 0 : i32
    return %arg0, %c0_i32, %arg2, %c0_i32_0 : i32, i32, i32, i32
  }
  func.func @transform_3(%arg0: i32, %arg1: i32, %arg2: i32) -> (i32, i32) {
    %c0_i32 = arith.constant 0 : i32
    %c0_i32_0 = arith.constant 0 : i32
    %c0_i32_1 = arith.constant 0 : i32
    return %c0_i32, %c0_i32_0 : i32, i32
  }
  func.func @transform_4(%arg0: i32, %arg1: i32, %arg2: i32) -> (i32, i32) {
    %c0_i32 = arith.constant 0 : i32
    %c0_i32_0 = arith.constant 0 : i32
    %c0_i32_1 = arith.constant 0 : i32
    return %c0_i32, %c0_i32_0 : i32, i32
  }
  func.func @transform_5(%arg0: i32, %arg1: i32, %arg2: i32) -> (i32, i32) {
    %c0_i32 = arith.constant 0 : i32
    %c0_i32_0 = arith.constant 0 : i32
    %c0_i32_1 = arith.constant 0 : i32
    return %c0_i32, %c0_i32_0 : i32, i32
  }
  func.func @transform_6(%arg0: i32, %arg1: i32, %arg2: i32) -> (i32, i32) {
    %c0_i32 = arith.constant 0 : i32
    %c0_i32_0 = arith.constant 0 : i32
    %c0_i32_1 = arith.constant 0 : i32
    return %c0_i32, %c0_i32_0 : i32, i32
  }
  func.func @transform_7(%arg0: i32, %arg1: i32, %arg2: i32) -> (i32, i32) {
    %c0_i32 = arith.constant 0 : i32
    %c0_i32_0 = arith.constant 0 : i32
    %c0_i32_1 = arith.constant 0 : i32
    return %c0_i32, %c0_i32_0 : i32, i32
  }
  func.func @transform_8(%arg0: i32, %arg1: i32, %arg2: i32) -> (i32, i32) {
    %c0_i32 = arith.constant 0 : i32
    %c0_i32_0 = arith.constant 0 : i32
    %c0_i32_1 = arith.constant 0 : i32
    return %c0_i32, %c0_i32_0 : i32, i32
  }
  func.func @transform_9(%arg0: i32, %arg1: i32, %arg2: i32) -> (i32, i32, i32) {
    %c0_i32 = arith.constant 0 : i32
    %c0_i32_0 = arith.constant 0 : i32
    return %arg0, %arg1, %c0_i32 : i32, i32, i32
  }
}

</mosaic_0001>

<bundles_post_ra>
// kernel: tpu_custom_call.1
= control target key start
LH: loop header
LB: loop body
LE: loop exit
PB: predicated region body
PF: predicated region fallthrough
CT: control target
= control target key end

     0   :  { %s2165_s0 = inlined_call_operand.hbm [shape: f32[2,8,32], index: 0, kind: input, shape index: {}]   ;;  %s2166_s1 = inlined_call_operand.vmem [shape: f32[2,4,8,16], index: 1, kind: input, shape index: {}]   ;;  %s2167_s2 = inlined_call_operand.hbm [shape: f32[2,4,8,16], index: 2, kind: input, shape index: {}]   ;;  %s2168_s3 = inlined_call_operand.vmem [shape: f32[32,64], index: 3, kind: input, shape index: {}]   ;;  %s2169_s4 = inlined_call_operand.vmem [shape: f32[1,64], index: 4, kind: input, shape index: {}]   ;;  %s2170_s5 = inlined_call_operand.vmem [shape: f32[64,32], index: 5, kind: input, shape index: {}]   ;;  %s2171_s6 = inlined_call_operand.vmem [shape: f32[1,32], index: 6, kind: input, shape index: {}]   ;;  %s2172_s7 = inlined_call_operand.vmem [shape: f32[1,32], index: 7, kind: input, shape index: {}]   ;;  %s2173_s8 = inlined_call_operand.vmem [shape: f32[1,32], index: 8, kind: input, shape index: {}]   ;;  %s2174_s9 = inlined_call_operand.hbm [shape: f32[2,8,32], index: 9, kind: output, shape index: {}]  }
   0x1   :  { %2179 = sst [smem:[#allocation20_spill]] %s2165_s0 }
   0x2   :  { %14 = vsyncpa [#allocation7], 0 }
   0x3   :  { %16 = vsyncpa [#allocation7 + $0x1], 0 }
   0x4   :  { %17 = vsyncpa [#allocation10], 0 }
   0x5   :  { %19 = vsyncpa [#allocation10 + $0x1], 0 }
   0x6   :  { %20 = vsyncpa [#allocation8], 0 }
   0x7   :  { %22 = vsyncpa [#allocation8 + $0x1], 0  ;;  %s1776_s30 = smov 0   ;;  %s1778_s10 = smov 0  }
   0x8   :  { %s1780_s11 = smov 0   ;;  %s1782_s12 = smov 0  }
   0x9   :  { %s1784_s13 = smov 0   ;;  %s1786_s14 = smov 0  }
   0xa LB: > { %2180 = sst [smem:[#allocation15_spill]] %s1690_s30  ;;  %s1413_s15 = sadd.s32 4294967295, %s1710_s14   ;;  %s1710_s14 = sphi %s1786_s14, %s28_s14   ;;  %s1706_s13 = sphi %s1784_s13, %s2199_s13   ;;  %s1702_s12 = sphi %s1782_s12, %s2198_s12   ;;  %s1698_s11 = sphi %s1780_s11, %s2194_s11   ;;  %s1694_s10 = sphi %s1778_s10, %s2197_s10   ;;  %s1690_s30 = sphi %s1776_s30, %s2196_s30  }
   0xb   : > { %2181 = sst [smem:[#allocation16_spill]] %s1698_s11  ;;  %s1414_s16 = sadd.s32 4294967294, %s1710_s14  }
   0xc   : > { %s47_s17 = sadd.s32 1, %s1706_s13  ;;  %s56_s18 = sadd.s32 1, %s1698_s11 }
   0xd   : > { %p49_p0 = scmp.ge.s32.totalorder %s47_s17, 2  ;;  %p63_p1 = scmp.ne.s32.totalorder %s1698_s11, %s1694_s10 }
   0xe   : > { %p64_p2 = scmp.eq.s32.totalorder %s1710_s14, 0  ;;  %p69_p3 = scmp.ne.s32.totalorder %s1694_s10, %s1690_s30 }
   0xf   : > { %s2201_s17 = smov (%p49_p0, %s47_s17), 0  ;;  %p70_p5 = scmp.eq.s32.totalorder %s1413_s15, 0 }
  0x10   : > { %2182 = sst [smem:[#allocation17_spill]] %s2201_s17  ;;  %p1817_p4 = por %p64_p2, %p63_p1 }
  0x11   : > { %s51_s20 = ssub.s32 %s1706_s13, %s2201_s17  ;;  %p277_p6 = scmp.eq.s32.totalorder %s1413_s15, 1 }
  0x12   : > { %p54_p7 = scmp.eq.s32.totalorder %s51_s20, 0  ;;  %p1823_p8 = por %p70_p5, %p69_p3 }
  0x13   : > { %p1827_p9 = por %p277_p6, %p63_p1  ;;  %p283_p10 = scmp.eq.s32.totalorder %s1414_s16, 1 }
  0x14   : > { %s1832_s23 = scalar_select %p54_p7, %s1698_s11, %s56_s18  }
  0x15   : > { %p1834_p11 = por %p283_p10, %p69_p3  ;;  %p1416_p12 = scmp.ge.s32.totalorder %s1710_s14, 2 }
  0x16   : > { %2186 = sst [smem:[#allocation18_spill]] %s1832_s23  ;;  %p1465_p13 = scmp.lt.s32.totalorder %s1710_s14, 2 }
  0x17   : > { %s2187_s24 = scalar_select %p1834_p11, 1, 0 }
  0x18   : > { %s1841_s25 = sand.u32 1, %s1698_s11   ;;  %s1418_s27 = sshll.u32 %s1706_s13, 3 }
  0x19   : > { %2188 = sst [smem:[#allocation19_spill]] %s2187_s24  ;;  %s1417_s26 = sshll.u32 %s1841_s25, 3 }
  0x1a   : > { %s2189_s0 = sld [smem:[#allocation20_spill]]  ;;  %s325_s16 = scalar_lea.vmem [#allocation6], %s1417_s26 }
  0x1b   : > { %s334_s18 = sshll.u32 %s325_s16, 4  ;;  %p1850_p0 = pnand %p1465_p13, %p1817_p4  ;;  %s335_s18 = int_to_ptr.vmem [resolvable:$true] %s334_s18 }
  0x1c   : > { %p1422_p1 = scmp.ge.s32.totalorder %s1710_s14, 1  ;;  %p373_p2 = scmp.lt.s32.totalorder %s1710_s14, 3 }
  0x1d   : > { %s322_s23 = scalar_lea.sflag [#allocation7], %s1841_s25  ;;  %s1446_s26 = sshll.u32 %s1706_s13, 5 }
  0x1e   : > { %p374_p3 = pnand %p1422_p1, %p373_p2  ;;  %s353_s11 = scalar_lea.sflag [#allocation10], %s1841_s25 }
  0x1f   : > { %s1712_s24 = smov 128   ;;  %s1713_s30 = smov 8  }
  0x20   : > { %s330_s15 = scalar_lea.hbm %s2189_s0, %s1418_s27  ;;  %s1419_s27 = sshll.u32 %s1841_s25, 5 }
  0x21   : > { %s332_s20 = sshll.u32 %s330_s15, 4  ;;  %s362_s15 = scalar_lea.hbm %s2167_s2, %s1446_s26  ;;  %s333_s20 = int_to_ptr.hbm [resolvable:$true] %s332_s20 }
  0x22   : > { %1457 = dma.hbm_to_vmem [thread:$0]  (!%p1850_p0), %s333_s20, 128, %s335_s18, %s322_s23  }
  0x23   : > { %s356_s16 = scalar_lea.vmem [#allocation9], %s1419_s27  ;;  %s363_s0 = sshll.u32 %s362_s15, 4  ;;  %s364_s0 = int_to_ptr.hbm [resolvable:$true] %s363_s0 }
  0x24   : > { %s365_s19 = sshll.u32 %s356_s16, 4  ;;  %377 = sbr.rel (%p374_p3) target bundleno = 1530 (0x5fa), region = 56  ;;  %s366_s19 = int_to_ptr.vmem [resolvable:$true] %s365_s19 }
  0x25   : > { %1460 = dma.hbm_to_vmem [thread:$0]  (!%p1850_p0), %s364_s0, 512, %s366_s19, %s353_s11, %s1712_s24, %s1712_s24, %s1713_s30  }
  0x26   : > { %s1868_s23 = sand.u32 (!%p374_p3), 1, %s1694_s10  }
  0x27   : > { %s1423_s18 = sshll.u32 (!%p374_p3), %s1868_s23, 3  ;;  %s380_s20 = scalar_lea.sflag (!%p374_p3), [#allocation7], %s1868_s23 }
  0x28   : > { %s383_s27 = scalar_lea.vmem (!%p374_p3), [#allocation6], %s1423_s18 }
  0x29   : > { %1677 = dma.done.wait (%p1823_p8), %s380_s20, 128  }
  0x2a   : > { %1679 = vsyncadd (%p1823_p8), %s380_s20, 4294967168  ;;  %s1424_s0 = sshll.u32 %s1868_s23, 5  ;;  %s390_s30 = scalar_lea.sflag [#allocation10], %s1868_s23 }
  0x2b   : > { %s1880_s11 = scalar_lea.vmem [#allocation9], %s1424_s0 }
  0x2c   : > { %1681 = dma.done.wait (%p1823_p8), %s390_s30, 512  }
  0x2d   : > { %1683 = vsyncadd (%p1823_p8), %s390_s30, 4294966784  ;;  %v458_v0 = vld [vmem:[%s2168_s3 + $0x18] sm:$0xff]  ;;  %v457_v1 = vld [vmem:[%s2168_s3 + $0x10] sm:$0xff]  ;;  %vm463_vm0 = vcmask 261120   ;;  %s1714_s20 = smov 112   ;;  %s1715_s0 = smov 96  }
  0x2e   : > { %479 = vmatpush.msra.mxu0 %v458_v0  ;;  %v456_v2 = vld [vmem:[%s2168_s3 + $0x8] sm:$0xff]  ;;  %v455_v3 = vld [vmem:[%s2168_s3] sm:$0xff]  ;;  %s1716_s30 = smov 80   ;;  %p442_p4 = scmp.lt.s32.totalorder %s1702_s12, 1  ;;  %v1717_v8 = vmov 1983009808  }
  0x2f   : > { %v1898_v4 = vld [vmem:[%s383_s27] sm:$0xff]  ;;  %v503_v9 = vunpack.c.l.s4 %v1717_v8  ;;  %vm498_vm1 = vcmask 1047556   ;;  %vm608_vm2 = vcmask 130048   ;;  %v1718_v19 = vmov 1934713408   ;;  %s1723_s28 = smov 32  }
  0x30   : > { %480 = vmatpush.msra.mxu0 %v457_v1  ;;  %v1532_v5 = vld [vmem:[%s2169_s4] ss:$0 sm:$0xff]  ;;  %s443_s27 = scalar_select %p442_p4, %s1702_s12, 1  ;;  %v527_v20 = vunpack.c.l.s4 %v1718_v19  ;;  %vm613_vm3 = vcmask 7168   ;;  %vm751_vm4 = vcmask 64512  }
  0x31   : > { %v1910_v15 = vunpack.c.0.s8 %v503_v9  ;;  %s1724_s29 = smov 16   ;;  %s1443_s19 = sshll.u32 %s1702_s12, 3 }
  0x32   : > { %481 = vmatpush.msra.mxu0 %v456_v2  ;;  %s1447_s17 = sshll.u32 %s443_s27, 5  ;;  %v1919_v26 = vunpack.c.0.s8 %v527_v20  ;;  %s441_s12 = scalar_lea.vmem [#allocation11], %s1423_s18 }
  0x33   : > { %s449_s26 = scalar_lea.vmem %s2166_s1, %s1447_s17  ;;  %s1282_s17 = scalar_lea.hbm %s2174_s9, %s1443_s19 }
  0x34   : > { %482 = vmatpush.msra.mxu0 %v455_v3  ;;  %v626_v13 = vld [vmem:[%s449_s26] sm:$0xff]  ;;  %v627_v14 = vld [vmem:[%s449_s26 + $0x8] sm:$0xff]  ;;  %v629_v23 = vld [vmem:[%s449_s26 + $0x18] sm:$0xff]  ;;  %s1644_s18 = scalar_lea.hbm %s2174_s9, 16 }
  0x35   : > { %1428 = vmatmul.msk.f32.vlgmr.msra.gmra.mxu0 %vm463_vm0, %v1898_v4  ;;  %1429 = vmatpush.xpose.msk.msra.mxu1 %vm608_vm2, %v626_v13  ;;  %v628_v29 = vld [vmem:[%s449_s26 + $0x10] sm:$0xff]  ;;  %s1284_s26 = sshll.u32 %s441_s12, 4  ;;  %s1285_s26 = int_to_ptr.vmem [resolvable:$true] %s1284_s26 }
  0x36   : > { %1431 = vmatpush.xpose.msk.msra.mxu3 %vm608_vm2, %v627_v14 }
  0x39   : > { %1435 = vmatpush.xpose.msk.msrb.mxu1 %vm608_vm2, %v629_v23 }
  0x3a   : > { %1433 = vmatpush.xpose.msk.msrb.mxu3 %vm608_vm2, %v628_v29 }
  0xb2   : > { %v484_v6 = vpop.f32.mrf.mxu0 }
  0xb3   : > { %v485_v7 = vadd.f32 %v1532_v5, %v484_v6 }
  0xb5   : > { %488 = vrot.lane.b32.xlu1 %v485_v7, %s1714_s20  ;;  %491 = vrot.lane.b32.xlu0 %v485_v7, %s1715_s0  ;;  %v500_v12 = vrot.slane %v485_v7, 4 }
  0xbd   : > { %494 = vrot.lane.b32.xlu0 %v485_v7, %s1716_s30 }
 0x127   : > { %v492_v10 = vpop.permute.xlu0 %491  ;;  %v489_v17 = vpop.permute.xlu1 %488 }
 0x128   : > { %v497_v11 = vrot.slane %v492_v10, 4  ;;  %v501_v16 = vsel %vm498_vm1, %v492_v10, %v500_v12  ;;  %v512_v22 = vrot.slane %v489_v17, 4 }
 0x129   : > { %v509_v21 = vperm.slane %v501_v16, %v1910_v15 }
 0x12a   : > { %v499_v18 = vsel %vm498_vm1, %v497_v11, %v485_v7 }
 0x12b   : > { %v505_v24 = vperm.slane %v499_v18, %v1910_v15  ;;  %v536_v30 = vrot.slane %v509_v21, 4 }
 0x12d   : > { %v524_v33 = vrot.slane %v505_v24, 4 }
 0x12f   : > { %v495_v25 = vpop.permute.xlu0 %494 }
 0x130   : > { %v510_v27 = vrot.slane %v495_v25, 4  ;;  %v513_v28 = vsel %vm498_vm1, %v495_v25, %v512_v22  ;;  %v1719_v25 = vmov -2.3819763e+38  }
 0x131   : > { %v521_v31 = vperm.slane %v513_v28, %v1910_v15  ;;  %614 = vst.msk [vmem:[#allocation3] sm:$0xff] %vm613_vm3, %v1719_v25 }
 0x132   : > { %v511_v32 = vsel %vm498_vm1, %v510_v27, %v489_v17  ;;  %615 = vst.msk [vmem:[#allocation3 + $0x8] sm:$0xff] %vm613_vm3, %v1719_v25 }
 0x133   : > { %v517_v34 = vperm.slane %v511_v32, %v1910_v15  ;;  %v534_v35 = vrot.slane %v521_v31, 4  ;;  %v537_v36 = vsel %vm498_vm1, %v521_v31, %v536_v30  ;;  %616 = vst.msk [vmem:[#allocation3 + $0x10] sm:$0xff] %vm613_vm3, %v1719_v25 }
 0x134   : > { %v545_v37 = vperm.slane %v537_v36, %v1919_v26  ;;  %617 = vst.msk [vmem:[#allocation3 + $0x18] sm:$0xff] %vm613_vm3, %v1719_v25 }
 0x135   : > { %v522_v38 = vrot.slane %v517_v34, 4  ;;  %v525_v39 = vsel %vm498_vm1, %v517_v34, %v524_v33  ;;  %v535_v40 = vsel %vm498_vm1, %v534_v35, %v509_v21 }
 0x136   : > { %v533_v41 = vperm.slane %v525_v39, %v1919_v26  ;;  %v541_v42 = vperm.slane %v535_v40, %v1919_v26  ;;  %v552_v43 = vrot.slane %v545_v37, 4  ;;  %v1720_v39 = vmov 0  }
 0x137   : > { %v523_v44 = vsel %vm498_vm1, %v522_v38, %v505_v24  ;;  %1529 = vset.pattern.permute.xlu2 %v1720_v39  ;;  %1530 = vset.pattern.permute.xlu1 %v1720_v39  ;;  %v1721_v40 = vmov 0.0  }
 0x138   : > { %v529_v45 = vperm.slane %v523_v44, %v1919_v26  ;;  %v548_v46 = vrot.slane %v533_v41, 4  ;;  %v550_v47 = vrot.slane %v541_v42, 4  ;;  %v553_v48 = vsel %vm498_vm1, 0.0, %v552_v43  ;;  %1531 = vset.pattern.permute.xlu0 %v1720_v39  ;;  %624 = vst.msk [vmem:[#allocation5 + $0x10] sm:$0xff] %vm608_vm2, %v1721_v40  ;;  %v1994_v41 = vld [vmem:[#allocation3] sm:$0xff] }
 0x139   : > { %v565_v49 = vsel %vm498_vm1, %v552_v43, %v541_v42  ;;  %v570_v50 = vrot.slane %v553_v48, 4  ;;  %618 = vst.msk [vmem:[#allocation4] sm:$0xff] %vm613_vm3, %v1721_v40 }
 0x13a   : > { %v546_v51 = vrot.slane %v529_v45, 4  ;;  %v549_v52 = vsel %vm498_vm1, 0.0, %v548_v46  ;;  %v551_v53 = vsel %vm498_vm1, 0.0, %v550_v47  ;;  %v554_v54 = vsel %vm498_vm1, %v548_v46, %v529_v45  ;;  %619 = vst.msk [vmem:[#allocation4 + $0x8] sm:$0xff] %vm613_vm3, %v1721_v40  ;;  %v748_v45 = vld [vmem:[#allocation3 + $0x8] sm:$0xff] }
 0x13b   : > { %v558_v55 = vperm.slane %v554_v54, %v1910_v15  ;;  %v559_v56 = vrot.slane %v549_v52, 4  ;;  %v569_v57 = vperm.slane %v565_v49, %v1910_v15  ;;  %v571_v58 = vsel %vm498_vm1, %v570_v50, %v551_v53  ;;  %620 = vst.msk [vmem:[#allocation4 + $0x10] sm:$0xff] %vm613_vm3, %v1721_v40  ;;  %v750_v46 = vld [vmem:[#allocation3 + $0x18] sm:$0xff] }
 0x13c   : > { %v547_v59 = vsel %vm498_vm1, 0.0, %v546_v51  ;;  %v575_v60 = vperm.slane %v571_v58, %v1910_v15  ;;  %621 = vst.msk [vmem:[#allocation4 + $0x18] sm:$0xff] %vm613_vm3, %v1721_v40  ;;  %v749_v51 = vld [vmem:[#allocation3 + $0x10] sm:$0xff] }
 0x13d   : > { %v560_v61 = vsel %vm498_vm1, %v559_v56, %v547_v59  ;;  %v578_v62 = vrot.slane %v558_v55, 4  ;;  %v590_v63 = vrot.slane %v569_v57, 4  ;;  %622 = vst.msk [vmem:[#allocation5] sm:$0xff] %vm608_vm2, %v1721_v40 }
 0x13e   : > { %v564_v0 = vperm.slane %v560_v61, %v1910_v15  ;;  %v588_v1 = vrot.slane %v575_v60, 4  ;;  %623 = vst.msk [vmem:[#allocation5 + $0x8] sm:$0xff] %vm608_vm2, %v1721_v40 }
 0x13f   : > { %v591_v2 = vsel %vm498_vm1, %v575_v60, %v590_v63  ;;  %625 = vst.msk [vmem:[#allocation5 + $0x18] sm:$0xff] %vm608_vm2, %v1721_v40  ;;  %v630_v63 = vld [vmem:[%s1880_s11] sm:$0xff] }
 0x140   : > { %v576_v3 = vrot.slane %v564_v0, 4  ;;  %v579_v5 = vsel %vm498_vm1, %v564_v0, %v578_v62  ;;  %v589_v6 = vsel %vm498_vm1, %v588_v1, %v569_v57  ;;  %v599_v7 = vperm.slane %v591_v2, %v1919_v26  ;;  %887 = vmatpush.msra.mxu2 %v630_v63  ;;  %v631_v0 = vld [vmem:[%s1880_s11 + $0x8] sm:$0xff]  ;;  %v632_v1 = vld [vmem:[%s1880_s11 + $0x10] sm:$0xff] }
 0x141   : > { %v587_v8 = vperm.slane %v579_v5, %v1919_v26  ;;  %v595_v9 = vperm.slane %v589_v6, %v1919_v26  ;;  %933 = vmatpush.msrb.mxu0 %v632_v1  ;;  %v633_v6 = vld [vmem:[%s1880_s11 + $0x18] sm:$0xff]  ;;  %s1722_s11 = smov 48  }
 0x142   : > { %v577_v10 = vsel %vm498_vm1, %v576_v3, %v558_v55  ;;  %v604_v11 = vrot.slane %v599_v7, 4 }
 0x143   : > { %v583_v12 = vperm.slane %v577_v10, %v1919_v26  ;;  %v600_v13 = vrot.slane %v595_v9, 4  ;;  %v606_v14 = vrot.slane %v587_v8, 4 }
 0x144   : > { %v605_v16 = vsel %vm498_vm1, %v604_v11, %v587_v8 }
 0x145   : > { %v601_v17 = vsel %vm498_vm1, %v600_v13, %v583_v12  ;;  %v602_v18 = vrot.slane %v583_v12, 4  ;;  %v607_v19 = vsel %vm498_vm1, %v599_v7, %v606_v14  ;;  %611 = vst.msk [vmem:[#allocation2 + $0x10] sm:$0xff] %vm608_vm2, %v605_v16 }
 0x146   : > { %609 = vst.msk [vmem:[#allocation2] sm:$0xff] %vm608_vm2, %v601_v17 }
 0x147   : > { %v603_v20 = vsel %vm498_vm1, %v595_v9, %v602_v18  ;;  %612 = vst.msk [vmem:[#allocation2 + $0x18] sm:$0xff] %vm608_vm2, %v607_v19 }
 0x148   : > { %610 = vst.msk [vmem:[#allocation2 + $0x8] sm:$0xff] %vm608_vm2, %v603_v20 }
 0x14c   : > { %v636_v24 = vld [vmem:[#allocation2 + $0x10] sm:$0xff] }
 0x14d   : > { %v634_v21 = vld [vmem:[#allocation2] sm:$0xff] }
 0x14e   : > { %1430 = vmatmul.msk.f32.vlgmr.msra.gmra.mxu1 %vm608_vm2, %v634_v21  ;;  %v637_v23 = vld [vmem:[#allocation2 + $0x18] sm:$0xff] }
 0x14f   : > { %v635_v22 = vld [vmem:[#allocation2 + $0x8] sm:$0xff]  ;;  %956 = vmatpush.msra.mxu1 %v633_v6  ;;  %v844_v6 = vld [vmem:[#allocation5 + $0x18] sm:$0xff] }
 0x150   : > { %1432 = vmatmul.msk.f32.vlgmr.msra.gmra.mxu3 %vm608_vm2, %v635_v22 }
 0x151   : > { %910 = vmatpush.msra.mxu3 %v631_v0 }
 0x156   : > { %1436 = vmatmul.msk.f32.vlgmr.msrb.gmra.mxu1 %vm608_vm2, %v637_v23 }
 0x158   : > { %1434 = vmatmul.msk.f32.vlgmr.msrb.gmra.mxu3 %vm608_vm2, %v636_v24 }
 0x1cb   : > { %v662_v27 = vpop.f32.mrf.mxu1 }
 0x1cc   : > { %v1970_v28 = vmul.f32 0.25, %v662_v27 }
 0x1ce   : > { %v752_v29 = vsel %vm751_vm4, %v1970_v28, -inf }
 0x1cf   : > { %753 = vmax.xlane.f32.xlu1 %v752_v29 }
 0x1d3   : > { %v688_v30 = vpop.f32.mrf.mxu3  ;;  %v740_v31 = vpop.f32.mrf.mxu1 }
 0x1d4   : > { %v1974_v32 = vmul.f32 0.25, %v688_v30  ;;  %v1976_v33 = vmul.f32 0.25, %v740_v31 }
 0x1d6   : > { %v755_v34 = vsel %vm751_vm4, %v1974_v32, -inf  ;;  %v761_v35 = vsel %vm751_vm4, %v1976_v33, -inf }
 0x1d7   : > { %756 = vmax.xlane.f32.xlu2 %v755_v34  ;;  %762 = vmax.xlane.f32.xlu0 %v761_v35  ;;  %v814_v35 = vld [vmem:[#allocation4 + $0x10] sm:$0xff] }
 0x1db   : > { %v714_v36 = vpop.f32.mrf.mxu3 }
 0x1dc   : > { %v1982_v37 = vmul.f32 0.25, %v714_v36 }
 0x1de   : > { %v758_v38 = vsel %vm751_vm4, %v1982_v37, -inf }
 0x1df   : > { %759 = vmax.xlane.f32.xlu2 %v758_v38 }
 0x242   : > { %v754_v42 = vpop.xlane.xlu1 %753 }
 0x243   : > { %v1997_v43 = vmax.f32 %v1994_v41, %v754_v42 }
 0x245   : > { %v768_v44 = vsub.f32 %v1994_v41, %v1997_v43  ;;  %969 = vst.msk [vmem:[#allocation3] sm:$0xff] %vm613_vm3, %v1997_v43  ;;  %782 = vperm.xlu2 %1529, %v1997_v43   ;;  %v842_v41 = vld [vmem:[#allocation5 + $0x8] sm:$0xff] }
 0x247   : > { %v772_v25 = vmul.f32 1.442695, %v768_v44  ;;  %v843_v44 = vld [vmem:[#allocation5 + $0x10] sm:$0xff] }
 0x24a   : > { %v757_v47 = vpop.xlane.xlu2 %756  ;;  %v763_v48 = vpop.xlane.xlu0 %762 }
 0x24b   : > { %v765_v49 = vmax.f32 %v748_v45, %v757_v47  ;;  %v767_v50 = vmax.f32 %v750_v46, %v763_v48 }
 0x24d   : > { %970 = vst.msk [vmem:[#allocation3 + $0x8] sm:$0xff] %vm613_vm3, %v765_v49  ;;  %787 = vperm.xlu2 %1529, %v765_v49   ;;  %797 = vperm.xlu1 %1530, %v767_v50   ;;  %v771_v56 = vsub.f32 %v750_v46, %v767_v50  ;;  %v769_v59 = vsub.f32 %v748_v45, %v765_v49 }
 0x24e   : > { %972 = vst.msk [vmem:[#allocation3 + $0x18] sm:$0xff] %vm613_vm3, %v767_v50 }
 0x24f   : > { %v778_v57 = vmul.f32 1.442695, %v771_v56  ;;  %v774_v60 = vmul.f32 1.442695, %v769_v59  ;;  %v815_v59 = vld [vmem:[#allocation4 + $0x18] sm:$0xff] }
 0x252   : > { %v760_v52 = vpop.xlane.xlu2 %759 }
 0x253   : > { %v766_v53 = vmax.f32 %v749_v51, %v760_v52 }
 0x255   : > { %v770_v54 = vsub.f32 %v749_v51, %v766_v53  ;;  %971 = vst.msk [vmem:[#allocation3 + $0x10] sm:$0xff] %vm613_vm3, %v766_v53  ;;  %792 = vperm.xlu2 %1529, %v766_v53  }
 0x257   : > { %v776_v55 = vmul.f32 1.442695, %v770_v54 }
 0x259   : > { %1536 = vpow2.f32 %v776_v55 }
 0x25a   : > { %1538 = vpow2.f32 %v778_v57 }
 0x25b   : > { %1540 = vpow2.f32 %v774_v60 }
 0x25f   : > { %v2007_v58 = vpop.eup %1536 }
 0x260   : > { %857 = vperm.xlu1 %1530, %v2007_v58   ;;  %v2010_v61 = vpop.eup %1538  ;;  %v818_v36 = vmul.f32 %v2007_v58, %v814_v35 }
 0x261   : > { %v2013_v62 = vpop.eup %1540  ;;  %v819_v60 = vmul.f32 %v2010_v61, %v815_v59 }
 0x268   : > { %862 = vperm.xlu1 %1530, %v2010_v61  }
 0x270   : > { %852 = vperm.xlu1 %1530, %v2013_v62  }
 0x29f   : > { %v783_v2 = vpop.permute.xlu2 %782 }
 0x2a0   : > { %v800_v3 = vsub.f32 %v1970_v28, %v783_v2  ;;  %v812_v28 = vld [vmem:[#allocation4] sm:$0xff] }
 0x2a2   : > { %v804_v5 = vmul.f32 1.442695, %v800_v3  ;;  %v813_v3 = vld [vmem:[#allocation4 + $0x8] sm:$0xff] }
 0x2a4   : > { %1542 = vpow2.f32 %v804_v5 }
 0x2a7   : > { %v788_v7 = vpop.permute.xlu2 %787 }
 0x2a8   : > { %v801_v8 = vsub.f32 %v1974_v32, %v788_v7 }
 0x2aa   : > { %v1543_v9 = vpop.eup %1542  ;;  %v806_v10 = vmul.f32 1.442695, %v801_v8 }
 0x2ab   : > { %1437 = vmatmul.msk.f32.vlgmr.msra.gmra.mxu2 %vm751_vm4, %v1543_v9  ;;  %v820_v11 = vsel %vm751_vm4, %v1543_v9, 0.0 }
 0x2ac   : > { %1544 = vpow2.f32 %v806_v10  ;;  %821 = vadd.xlane.f32.xlu0 %v820_v11  ;;  %v817_v10 = vmul.f32 %v2013_v62, %v813_v3 }
 0x2af   : > { %v793_v12 = vpop.permute.xlu2 %792 }
 0x2b0   : > { %v802_v13 = vsub.f32 %v1982_v37, %v793_v12 }
 0x2b2   : > { %v1545_v14 = vpop.eup %1544  ;;  %v808_v16 = vmul.f32 1.442695, %v802_v13 }
 0x2b3   : > { %1438 = vmatmul.msk.f32.vlgmr.msra.gmra.mxu3 %vm751_vm4, %v1545_v14  ;;  %v823_v24 = vsel %vm751_vm4, %v1545_v14, 0.0 }
 0x2b4   : > { %1546 = vpow2.f32 %v808_v16 }
 0x2ba   : > { %v1547_v17 = vpop.eup %1546 }
 0x2bb   : > { %1439 = vmatmul.msk.f32.vlgmr.msrb.gmra.mxu0 %vm751_vm4, %v1547_v17  ;;  %v826_v18 = vsel %vm751_vm4, %v1547_v17, 0.0 }
 0x2bc   : > { %827 = vadd.xlane.f32.xlu2 %v826_v18 }
 0x2bf   : > { %v798_v19 = vpop.permute.xlu1 %797 }
 0x2c0   : > { %v803_v20 = vsub.f32 %v1976_v33, %v798_v19 }
 0x2c2   : > { %v810_v21 = vmul.f32 1.442695, %v803_v20 }
 0x2c4   : > { %1548 = vpow2.f32 %v810_v21 }
 0x2c5   : > { %1550 = vpow2.f32 %v772_v25 }
 0x2ca   : > { %v1549_v22 = vpop.eup %1548 }
 0x2cb   : > { %1440 = vmatmul.msk.f32.vlgmr.msra.gmra.mxu1 %vm751_vm4, %v1549_v22  ;;  %v829_v23 = vsel %vm751_vm4, %v1549_v22, 0.0  ;;  %v1551_v27 = vpop.eup %1550 }
 0x2cc   : > { %830 = vadd.xlane.f32.xlu0 %v829_v23  ;;  %v816_v30 = vmul.f32 %v1551_v27, %v812_v28 }
 0x2d2   : > { %v858_v29 = vpop.permute.xlu1 %857 }
 0x2d3   : > { %v867_v50 = vmul.f32 %v858_v29, %v843_v44 }
 0x2d4   : > { %824 = vadd.xlane.f32.xlu0 %v823_v24 }
 0x2da   : > { %v863_v33 = vpop.permute.xlu1 %862 }
 0x2db   : > { %v868_v11 = vmul.f32 %v863_v33, %v844_v6 }
 0x2e2   : > { %v853_v42 = vpop.permute.xlu1 %852 }
 0x2e3   : > { %v866_v46 = vmul.f32 %v853_v42, %v842_v41 }
 0x2e8   : > { %847 = vperm.xlu0 %1531, %v1551_v27  }
 0x31f   : > { %v822_v31 = vpop.xlane.xlu0 %821 }
 0x320   : > { %v832_v32 = vadd.f32 %v822_v31, %v816_v30  ;;  %v841_v30 = vld [vmem:[#allocation5] sm:$0xff] }
 0x322   : > { %837 = vst.msk [vmem:[#allocation4] sm:$0xff] %vm613_vm3, %v832_v32 }
 0x329   : > { %v980_v34 = vld [vmem:[#allocation4] sm:$0xff] }
 0x32a   : > { %1552 = vrcp.f32 %v980_v34  ;;  %v995_v45 = vand.u32 2147483648, %v980_v34  ;;  %v993_v48 = vand.u32 2147483647, %v980_v34  ;;  %vm989_vm6 = vweird.f32 %v980_v34 }
 0x32c   : > { %v996_v54 = vor.u32 1.1754944e-38, %v995_v45  ;;  %vm994_vm8 = vcmp.eq.f32.partialorder %v993_v48, 8.507059e+37 }
 0x32f   : > { %v828_v37 = vpop.xlane.xlu2 %827 }
 0x330   : > { %v1553_v38 = vpop.eup %1552  ;;  %v834_v39 = vadd.f32 %v828_v37, %v818_v36 }
 0x331   : > { %v985_v40 = vmul.f32 %v1553_v38, %v980_v34  ;;  %vm990_vm5 = vweird.f32 %v1553_v38 }
 0x332   : > { %839 = vst.msk [vmem:[#allocation4 + $0x10] sm:$0xff] %vm613_vm3, %v834_v39  ;;  %vm991_vm7 = vmor %vm989_vm6, %vm990_vm5 }
 0x333   : > { %v986_v43 = vsub.f32 1.0, %v985_v40 }
 0x335   : > { %v987_v47 = vmul.f32 %v1553_v38, %v986_v43 }
 0x336   : > { %v912_v49 = vpop.f32.mrf.mxu3 }
 0x337   : > { %v962_v51 = vadd.f32 %v912_v49, %v866_v46  ;;  %v988_v52 = vadd.f32 %v1553_v38, %v987_v47 }
 0x338   : > { %v935_v53 = vpop.f32.mrf.mxu0 }
 0x339   : > { %966 = vst.msk [vmem:[#allocation5 + $0x8] sm:$0xff] %vm608_vm2, %v962_v51  ;;  %v963_v55 = vadd.f32 %v935_v53, %v867_v50  ;;  %v992_v56 = vsel %vm991_vm7, %v1553_v38, %v988_v52  ;;  %v982_v57 = vld [vmem:[#allocation4 + $0x10] sm:$0xff]  ;;  %v889_v38 = vpop.f32.mrf.mxu2 }
 0x33a   : > { %v997_v58 = vsel %vm994_vm8, %v996_v54, %v992_v56  ;;  %1554 = vrcp.f32 %v982_v57  ;;  %v1023_v7 = vand.u32 2147483648, %v982_v57  ;;  %v1021_v9 = vand.u32 2147483647, %v982_v57 }
 0x33b   : > { %967 = vst.msk [vmem:[#allocation5 + $0x10] sm:$0xff] %vm608_vm2, %v963_v55  ;;  %1042 = vperm.xlu1 %1530, %v997_v58   ;;  %vm1017_vm10 = vweird.f32 %v982_v57  ;;  %vm1204_vm8 = vcmask 523264  }
 0x33c   : > { %v1024_v16 = vor.u32 1.1754944e-38, %v1023_v7  ;;  %vm1022_vm12 = vcmp.eq.f32.partialorder %v1021_v9, 8.507059e+37 }
 0x33f   : > { %v831_v63 = vpop.xlane.xlu0 %830 }
 0x340   : > { %v1555_v0 = vpop.eup %1554  ;;  %v835_v1 = vadd.f32 %v831_v63, %v819_v60  ;;  %v977_v63 = vld [vmem:[#allocation5 + $0x8] sm:$0xff] }
 0x341   : > { %v1013_v2 = vmul.f32 %v1555_v0, %v982_v57  ;;  %vm1018_vm9 = vweird.f32 %v1555_v0 }
 0x342   : > { %840 = vst.msk [vmem:[#allocation4 + $0x18] sm:$0xff] %vm613_vm3, %v835_v1  ;;  %vm1019_vm11 = vmor %vm1017_vm10, %vm1018_vm9  ;;  %v978_v49 = vld [vmem:[#allocation5 + $0x10] sm:$0xff] }
 0x343   : > { %v1014_v5 = vsub.f32 1.0, %v1013_v2 }
 0x345   : > { %v1015_v8 = vmul.f32 %v1555_v0, %v1014_v5 }
 0x347   : > { %v825_v12 = vpop.xlane.xlu0 %824  ;;  %v1016_v13 = vadd.f32 %v1555_v0, %v1015_v8 }
 0x348   : > { %v833_v61 = vadd.f32 %v825_v12, %v817_v10  ;;  %v958_v14 = vpop.f32.mrf.mxu1 }
 0x349   : > { %v964_v17 = vadd.f32 %v958_v14, %v868_v11  ;;  %v1020_v18 = vsel %vm1019_vm11, %v1555_v0, %v1016_v13  ;;  %v983_v19 = vld [vmem:[#allocation4 + $0x18] sm:$0xff] }
 0x34a   : > { %838 = vst.msk [vmem:[#allocation4 + $0x8] sm:$0xff] %vm613_vm3, %v833_v61  ;;  %v1025_v20 = vsel %vm1022_vm12, %v1024_v16, %v1020_v18  ;;  %1556 = vrcp.f32 %v983_v19  ;;  %v1037_v24 = vand.u32 2147483648, %v983_v19  ;;  %v1035_v27 = vand.u32 2147483647, %v983_v19 }
 0x34b   : > { %968 = vst.msk [vmem:[#allocation5 + $0x18] sm:$0xff] %vm608_vm2, %v964_v17  ;;  %1052 = vperm.xlu2 %1529, %v1025_v20   ;;  %vm1031_vm14 = vweird.f32 %v983_v19 }
 0x34c   : > { %v1038_v31 = vor.u32 1.1754944e-38, %v1037_v24  ;;  %vm1036_vm3 = vcmp.eq.f32.partialorder %v1035_v27, 8.507059e+37 }
 0x350   : > { %v1557_v62 = vpop.eup %1556 }
 0x351   : > { %v1027_v21 = vmul.f32 %v1557_v62, %v983_v19  ;;  %v981_v22 = vld [vmem:[#allocation4 + $0x8] sm:$0xff]  ;;  %vm1032_vm13 = vweird.f32 %v1557_v62 }
 0x352   : > { %1558 = vrcp.f32 %v981_v22  ;;  %vm1033_vm15 = vmor %vm1031_vm14, %vm1032_vm13  ;;  %v1009_v39 = vand.u32 2147483648, %v981_v22  ;;  %v1007_v42 = vand.u32 2147483647, %v981_v22  ;;  %vm1003_vm5 = vweird.f32 %v981_v22  ;;  %v979_v56 = vld [vmem:[#allocation5 + $0x18] sm:$0xff] }
 0x353   : > { %v1028_v23 = vsub.f32 1.0, %v1027_v21 }
 0x354   : > { %v1010_v44 = vor.u32 1.1754944e-38, %v1009_v39  ;;  %vm1008_vm7 = vcmp.eq.f32.partialorder %v1007_v42, 8.507059e+37 }
 0x355   : > { %v1029_v25 = vmul.f32 %v1557_v62, %v1028_v23 }
 0x357   : > { %v1030_v28 = vadd.f32 %v1557_v62, %v1029_v25 }
 0x358   : > { %v1559_v29 = vpop.eup %1558 }
 0x359   : > { %v1034_v32 = vsel %vm1033_vm15, %v1557_v62, %v1030_v28  ;;  %v999_v33 = vmul.f32 %v1559_v29, %v981_v22  ;;  %vm1004_vm4 = vweird.f32 %v1559_v29 }
 0x35a   : > { %v848_v34 = vpop.permute.xlu0 %847  ;;  %v1039_v35 = vsel %vm1036_vm3, %v1038_v31, %v1034_v32  ;;  %vm1005_vm6 = vmor %vm1003_vm5, %vm1004_vm4 }
 0x35b   : > { %v865_v36 = vmul.f32 %v848_v34, %v841_v30  ;;  %1057 = vperm.xlu1 %1530, %v1039_v35   ;;  %v1000_v37 = vsub.f32 1.0, %v999_v33 }
 0x35d   : > { %v961_v40 = vadd.f32 %v889_v38, %v865_v36  ;;  %v1001_v41 = vmul.f32 %v1559_v29, %v1000_v37 }
 0x35f   : > { %965 = vst.msk [vmem:[#allocation5] sm:$0xff] %vm608_vm2, %v961_v40  ;;  %v1002_v43 = vadd.f32 %v1559_v29, %v1001_v41 }
 0x361   : > { %v1006_v45 = vsel %vm1005_vm6, %v1559_v29, %v1002_v43 }
 0x362   : > { %v1011_v46 = vsel %vm1008_vm7, %v1010_v44, %v1006_v45 }
 0x363   : > { %1047 = vperm.xlu1 %1530, %v1011_v46  }
 0x366   : > { %v976_v50 = vld [vmem:[#allocation5] sm:$0xff] }
 0x3a5   : > { %v1053_v48 = vpop.permute.xlu2 %1052 }
 0x3a6   : > { %v1062_v51 = vmul.f32 %v1053_v48, %v978_v49 }
 0x3a8   : > { %v1064_v54 = vrot.slane %v1062_v51, 4 }
 0x3ad   : > { %v1043_v47 = vpop.permute.xlu1 %1042 }
 0x3ae   : > { %v1060_v52 = vmul.f32 %v1043_v47, %v976_v50 }
 0x3b0   : > { %v1067_v55 = vrot.slane %v1060_v52, 4  ;;  %v1066_v57 = vsel %vm498_vm1, %v1064_v54, %v1060_v52 }
 0x3b1   : > { %v1072_v60 = vperm.slane %v1066_v57, %v1910_v15 }
 0x3b2   : > { %v1068_v59 = vsel %vm498_vm1, %v1062_v51, %v1067_v55 }
 0x3b3   : > { %v1076_v3 = vperm.slane %v1068_v59, %v1910_v15  ;;  %v1091_v7 = vrot.slane %v1072_v60, 4  ;;  %v1199_v59 = vld [vmem:[%s2170_s5 + $0x38] sm:$0xff] }
 0x3b4   : > { %1216 = vmatpush.msrb.mxu2 %v1199_v59 }
 0x3b5   : > { %v1103_v10 = vrot.slane %v1076_v3, 4 }
 0x3cd   : > { %v1058_v53 = vpop.permute.xlu1 %1057 }
 0x3ce   : > { %v1063_v58 = vmul.f32 %v1058_v53, %v979_v56 }
 0x3d0   : > { %v1077_v1 = vrot.slane %v1063_v58, 4 }
 0x3d5   : > { %v1048_v0 = vpop.permute.xlu1 %1047 }
 0x3d6   : > { %v1061_v2 = vmul.f32 %v1048_v0, %v977_v63  ;;  %v1196_v63 = vld [vmem:[%s2170_s5 + $0x20] sm:$0xff]  ;;  %v1195_v0 = vld [vmem:[%s2170_s5 + $0x18] sm:$0xff] }
 0x3d8   : > { %v1078_v5 = vsel %vm498_vm1, %v1077_v1, %v1061_v2  ;;  %v1079_v6 = vrot.slane %v1061_v2, 4  ;;  %v1194_v1 = vld [vmem:[%s2170_s5 + $0x10] sm:$0xff]  ;;  %v1193_v2 = vld [vmem:[%s2170_s5 + $0x8] sm:$0xff] }
 0x3d9   : > { %v1084_v8 = vperm.slane %v1078_v5, %v1910_v15 }
 0x3da   : > { %v1080_v9 = vsel %vm498_vm1, %v1063_v58, %v1079_v6 }
 0x3db   : > { %v1088_v11 = vperm.slane %v1080_v9, %v1910_v15  ;;  %v1089_v12 = vrot.slane %v1084_v8, 4  ;;  %v1092_v13 = vsel %vm498_vm1, %v1084_v8, %v1091_v7 }
 0x3dc   : > { %v1100_v61 = vperm.slane %v1092_v13, %v1919_v26 }
 0x3dd   : > { %v1090_v14 = vsel %vm498_vm1, %v1089_v12, %v1072_v60  ;;  %v1101_v16 = vrot.slane %v1088_v11, 4  ;;  %v1104_v17 = vsel %vm498_vm1, %v1088_v11, %v1103_v10  ;;  %v1197_v60 = vld [vmem:[%s2170_s5 + $0x28] sm:$0xff]  ;;  %v1533_v11 = vld [vmem:[%s2171_s6] ss:$0 sm:$0xff] }
 0x3de   : > { %v1096_v18 = vperm.slane %v1090_v14, %v1919_v26  ;;  %v1112_v19 = vperm.slane %v1104_v17, %v1919_v26  ;;  %v1115_v20 = vrot.slane %v1100_v61, 4 }
 0x3df   : > { %v1102_v62 = vsel %vm498_vm1, %v1101_v16, %v1076_v3  ;;  %v1192_v3 = vld [vmem:[%s2170_s5] sm:$0xff]  ;;  %v1725_v16 = vmov 32.0  }
 0x3e0   : > { %v1108_v21 = vperm.slane %v1102_v62, %v1919_v26  ;;  %v1113_v22 = vrot.slane %v1096_v18, 4  ;;  %v1116_v23 = vsel %vm498_vm1, 0.0, %v1115_v20  ;;  %v1119_v24 = vrot.slane %v1112_v19, 4 }
 0x3e1   : > { %v1121_v25 = vsel %vm498_vm1, %v1115_v20, %v1096_v18  ;;  %v1126_v27 = vrot.slane %v1116_v23, 4  ;;  %1560 = vrcp.f32 %v1725_v16 }
 0x3e2   : > { %v1120_v28 = vsel %vm498_vm1, 0.0, %v1119_v24  ;;  %v1114_v29 = vsel %vm498_vm1, 0.0, %v1113_v22  ;;  %v1117_v30 = vrot.slane %v1108_v21, 4  ;;  %v1125_v31 = vperm.slane %v1121_v25, %v1910_v15 }
 0x3e3   : > { %v1137_v32 = vrot.slane %v1120_v28, 4  ;;  %v1127_v33 = vsel %vm498_vm1, %v1126_v27, %v1114_v29  ;;  %v1132_v34 = vsel %vm498_vm1, %v1119_v24, %v1108_v21 }
 0x3e4   : > { %v1118_v35 = vsel %vm498_vm1, 0.0, %v1117_v30  ;;  %v1131_v36 = vperm.slane %v1127_v33, %v1910_v15  ;;  %v1136_v37 = vperm.slane %v1132_v34, %v1910_v15  ;;  %v1145_v38 = vrot.slane %v1125_v31, 4 }
 0x3e5   : > { %v1138_v39 = vsel %vm498_vm1, %v1137_v32, %v1118_v35 }
 0x3e6   : > { %v1142_v40 = vperm.slane %v1138_v39, %v1910_v15  ;;  %v1146_v41 = vsel %vm498_vm1, %v1131_v36, %v1145_v38  ;;  %v1157_v42 = vrot.slane %v1136_v37, 4  ;;  %v1143_v43 = vrot.slane %v1131_v36, 4  ;;  %v1534_v36 = vld [vmem:[%s2172_s7] ss:$0 sm:$0xff] }
 0x3e7   : > { %v1154_v44 = vperm.slane %v1146_v41, %v1919_v26  ;;  %v1561_v17 = vpop.eup %1560  ;;  %v1535_v39 = vld [vmem:[%s2173_s8] ss:$0 sm:$0xff] }
 0x3e8   : > { %v1158_v45 = vsel %vm498_vm1, %v1142_v40, %v1157_v42  ;;  %v1144_v46 = vsel %vm498_vm1, %v1143_v43, %v1125_v31  ;;  %v1155_v47 = vrot.slane %v1142_v40, 4  ;;  %v1234_v18 = vmul.f32 32.0, %v1561_v17 }
 0x3e9   : > { %v1166_v48 = vperm.slane %v1158_v45, %v1919_v26  ;;  %v1173_v49 = vrot.slane %v1154_v44, 4  ;;  %v1150_v50 = vperm.slane %v1144_v46, %v1919_v26 }
 0x3ea   : > { %v1156_v51 = vsel %vm498_vm1, %v1155_v47, %v1136_v37  ;;  %v1235_v19 = vsub.f32 1.0, %v1234_v18 }
 0x3eb   : > { %v1174_v15 = vsel %vm498_vm1, %v1166_v48, %v1173_v49  ;;  %v1171_v52 = vrot.slane %v1166_v48, 4  ;;  %v1162_v53 = vperm.slane %v1156_v51, %v1919_v26  ;;  %v1169_v54 = vrot.slane %v1150_v50, 4  ;;  %v1198_v26 = vld [vmem:[%s2170_s5 + $0x30] sm:$0xff] }
 0x3ec   : > { %1184 = vrot.lane.b32.xlu1 %v1174_v15, %s1722_s11  ;;  %1217 = vmatpush.msrb.mxu2 %v1198_v26  ;;  %v1236_v20 = vmul.f32 %v1561_v17, %v1235_v19  ;;  %s1286_s11 = sshll.u32 %s1282_s17, 4  ;;  %s1287_s11 = int_to_ptr.hbm [resolvable:$true] %s1286_s11 }
 0x3ed   : > { %v1172_v55 = vsel %vm498_vm1, %v1171_v52, %v1154_v44  ;;  %v1167_v56 = vrot.slane %v1162_v53, 4  ;;  %v1170_v57 = vsel %vm498_vm1, %v1162_v53, %v1169_v54 }
 0x3ee   : > { %1180 = vrot.lane.b32.xlu0 %v1172_v55, %s1723_s28  ;;  %1176 = vrot.lane.b32.xlu2 %v1170_v57, %s1724_s29  ;;  %v1237_v62 = vadd.f32 %v1561_v17, %v1236_v20  ;;  %s1271_s28 = scalar_lea.sflag [#allocation8], %s1868_s23  ;;  %s1638_s29 = sshra.s32 %s1287_s11, 4  ;;  %s1639_s29 = int_to_ptr.hbm [resolvable:$true] %s1638_s29 }
 0x3ef   : > { %v1168_v58 = vsel %vm498_vm1, %v1167_v56, %v1150_v50  ;;  %1218 = vmatpush.msrb.mxu2 %v1197_v60  ;;  %vm1190_vm1 = vcmask 392192   ;;  %s1640_s15 = scalar_lea.hbm %s1639_s29, 8  ;;  %p1645_p8 = scmp.lt.s32.totalorder %s1639_s29, %s2174_s9 }
 0x3f0   : > { %p1641_p5 = scmp.ne.s32.totalorder %s1639_s29, %s1640_s15  ;;  %p1646_p10 = scmp.lt.s32.totalorder %s1644_s18, %s1640_s15 }
 0x3f1   : > { %1219 = vmatpush.msrb.mxu2 %v1196_v63 }
 0x3f2   : > { %p1642_p6 = pnand %p1641_p5, %p1827_p9  ;;  %p1647_p13 = por %p1646_p10, %p1645_p8 }
 0x3f3   : > { %1220 = vmatpush.msrb.mxu2 %v1195_v0 }
 0x3f4   : > { %p1643_p7 = pneg %p1642_p6 }
 0x3f5   : > { %1221 = vmatpush.msrb.mxu2 %v1194_v1 }
 0x3f6   : > { %p1648_p0 = pnand %p1647_p13, %p1643_p7 }
 0x3f7   : > { %1222 = vmatpush.msrb.mxu2 %v1193_v2 }
 0x3f9   : > { %1223 = vmatpush.msrb.mxu2 %v1192_v3 }
 0x448   : > { %v1177_v5 = vpop.permute.xlu2 %1176 }
 0x449   : > { %v1187_v6 = vsel %vm608_vm2, %v1168_v58, %v1177_v5  ;;  %vm1238_vm2 = vweird.f32 %v1561_v17 }
 0x44a   : > { %v1239_v21 = vsel %vm1238_vm2, %v1561_v17, %v1237_v62 }
 0x45e   : > { %v1185_v8 = vpop.permute.xlu1 %1184 }
 0x460   : > { %v1181_v7 = vpop.permute.xlu0 %1180 }
 0x461   : > { %v1189_v9 = vsel %vm463_vm0, %v1187_v6, %v1181_v7 }
 0x462   : > { %v1191_v10 = vsel %vm1190_vm1, %v1189_v9, %v1185_v8 }
 0x463   : > { %1441 = vmatmul.msk.f32.vlgmr.msrb.gmra.mxu2 %vm1204_vm8, %v1191_v10 }
 0x4e6   : > { %v1225_v12 = vpop.f32.mrf.mxu2 }
 0x4e7   : > { %v1226_v13 = vadd.f32 %v1533_v11, %v1225_v12 }
 0x4e9   : > { %v1229_v61 = vadd.f32 %v1226_v13, %v1898_v4 }
 0x4eb   : > { %v1230_v14 = vsel %vm463_vm0, %v1229_v61, 0.0 }
 0x4ec   : > { %1231 = vadd.xlane.f32.xlu2 %v1230_v14 }
 0x55f   : > { %v1232_v22 = vpop.xlane.xlu2 %1231 }
 0x560   : > { %v1240_v23 = vmul.f32 %v1239_v21, %v1232_v22 }
 0x562   : > { %v1241_v24 = vsub.f32 %v1229_v61, %v1240_v23 }
 0x564   : > { %v1242_v25 = vmul.f32 %v1241_v24, %v1241_v24 }
 0x566   : > { %v1243_v27 = vsel %vm463_vm0, %v1242_v25, 0.0 }
 0x567   : > { %1244 = vadd.xlane.f32.xlu0 %v1243_v27 }
 0x5da   : > { %v1245_v4 = vpop.xlane.xlu0 %1244 }
 0x5db   : > { %v1246_v28 = vmul.f32 %v1245_v4, %v1239_v21 }
 0x5dd   : > { %v1247_v29 = vadd.f32 1e-05, %v1246_v28 }
 0x5df   : > { %1562 = vrsqrt.f32 %v1247_v29  ;;  %vm1254_vm10 = vweird.f32 %v1247_v29 }
 0x5e5   : > { %v1563_v30 = vpop.eup %1562 }
 0x5e6   : > { %v1249_v31 = vmul.f32 %v1563_v30, %v1247_v29  ;;  %vm1255_vm9 = vweird.f32 %v1563_v30 }
 0x5e7   : > { %vm1256_vm11 = vmor %vm1254_vm10, %vm1255_vm9 }
 0x5e8   : > { %v1250_v32 = vmul.f32 %v1563_v30, %v1249_v31 }
 0x5ea   : > { %v1251_v33 = vmul.f32 0.5, %v1250_v32 }
 0x5ec   : > { %v1252_v34 = vsub.f32 1.5, %v1251_v33 }
 0x5ee   : > { %v1253_v35 = vmul.f32 %v1563_v30, %v1252_v34 }
 0x5f0   : > { %v1257_v37 = vsel %vm1256_vm11, %v1563_v30, %v1253_v35 }
 0x5f1   : > { %v1258_v38 = vmul.f32 %v1257_v37, %v1241_v24 }
 0x5f3   : > { %v1263_v40 = vmul.f32 %v1534_v36, %v1258_v38 }
 0x5f5   : > { %v1268_v41 = vadd.f32 %v1535_v39, %v1263_v40 }
 0x5f7   : > { %1269 = vst.msk [vmem:[%s441_s12] sm:$0xff] %vm463_vm0, %v1268_v41 }
 0x5f8   : > { %1651 = shalt.err (!%p1648_p0)
}
 0x5f9   : > { %1452 = dma.vmem_to_hbm [thread:$0]  (%p1827_p9), %s1285_s26, 128, %s1287_s11, %s1271_s28  }
 0x5fa PF: > { %s2191_s23 = sld [smem:[#allocation15_spill]]  ;;  %p1462_p1 = pnand %p1416_p12, %p1834_p11 }
 0x5fc   : > { %p1463_p2 = pneg %p1462_p1 }
 0x600   : > { %s1298_s30 = sand.u32 1, %s2191_s23  }
 0x601   : > { %s1299_s27 = scalar_lea.sflag [#allocation8], %s1298_s30 }
 0x602   : > { %1685 = dma.done.wait (%p1463_p2), %s1299_s27, 128  }
 0x603   : > { %1687 = vsyncadd (%p1463_p2), %s1299_s27, 4294967168  ;;  %s28_s14 = sadd.s32 1, %s1710_s14   ;;  %s2193_s17 = sld [smem:[#allocation16_spill]] }
 0x604   : > { %p25_p3 = scmp.ge.s32.totalorder %s28_s14, 4   ;;  %s2194_s11 = sld [smem:[#allocation18_spill]] }
 0x605   : > { %s2195_s22 = sld [smem:[#allocation17_spill]]  ;;  %s2196_s30 = smov %s1694_s10 }
 0x606   : > { %s2198_s12 = smov %s1706_s13 }
 0x607   :  { %27 = sbr.rel (!%p25_p3) target bundleno = 10 (0xa), region = 125 }
 0x609   : > { %s2197_s10 = smov %s2193_s17 }
 0x60b   : > { %s2199_s13 = smov %s2195_s22 }
 0x60c   :  { %1305 = vsyncpa [#allocation7], 1 }
 0x60d   :  { %1307 = vsyncpa [#allocation7 + $0x1], 1 }
 0x60e   :  { %1308 = vsyncpa [#allocation10], 1 }
 0x60f   :  { %1310 = vsyncpa [#allocation10 + $0x1], 1 }
 0x610   :  { %1311 = vsyncpa [#allocation8], 1 }
 0x611   :  { %1313 = vsyncpa [#allocation8 + $0x1], 1 }

// kernel: tpu_custom_call.1
= control target key start
LH: loop header
LB: loop body
LE: loop exit
PB: predicated region body
PF: predicated region fallthrough
CT: control target
= control target key end

     0   :  { %s2165_s0 = inlined_call_operand.hbm [shape: f32[2,8,32], index: 0, kind: input, shape index: {}]   ;;  %s2166_s1 = inlined_call_operand.vmem [shape: f32[2,4,8,16], index: 1, kind: input, shape index: {}]   ;;  %s2167_s2 = inlined_call_operand.hbm [shape: f32[2,4,8,16], index: 2, kind: input, shape index: {}]   ;;  %s2168_s3 = inlined_call_operand.vmem [shape: f32[32,64], index: 3, kind: input, shape index: {}]   ;;  %s2169_s4 = inlined_call_operand.vmem [shape: f32[1,64], index: 4, kind: input, shape index: {}]   ;;  %s2170_s5 = inlined_call_operand.vmem [shape: f32[64,32], index: 5, kind: input, shape index: {}]   ;;  %s2171_s6 = inlined_call_operand.vmem [shape: f32[1,32], index: 6, kind: input, shape index: {}]   ;;  %s2172_s7 = inlined_call_operand.vmem [shape: f32[1,32], index: 7, kind: input, shape index: {}]   ;;  %s2173_s8 = inlined_call_operand.vmem [shape: f32[1,32], index: 8, kind: input, shape index: {}]   ;;  %s2174_s9 = inlined_call_operand.hbm [shape: f32[2,8,32], index: 9, kind: output, shape index: {}]  }
   0x1   :  { %2179 = sst [smem:[#allocation20_spill]] %s2165_s0 }
   0x2   :  { %14 = vsyncpa [#allocation7], 0 }
   0x3   :  { %16 = vsyncpa [#allocation7 + $0x1], 0 }
   0x4   :  { %17 = vsyncpa [#allocation10], 0 }
   0x5   :  { %19 = vsyncpa [#allocation10 + $0x1], 0 }
   0x6   :  { %20 = vsyncpa [#allocation8], 0 }
   0x7   :  { %22 = vsyncpa [#allocation8 + $0x1], 0  ;;  %s1776_s30 = smov 0   ;;  %s1778_s10 = smov 0  }
   0x8   :  { %s1780_s11 = smov 0   ;;  %s1782_s12 = smov 0  }
   0x9   :  { %s1784_s13 = smov 0   ;;  %s1786_s14 = smov 0  }
   0xa LB: > { %2180 = sst [smem:[#allocation15_spill]] %s1690_s30  ;;  %s1413_s15 = sadd.s32 4294967295, %s1710_s14   ;;  %s1710_s14 = sphi %s1786_s14, %s28_s14   ;;  %s1706_s13 = sphi %s1784_s13, %s2199_s13   ;;  %s1702_s12 = sphi %s1782_s12, %s2198_s12   ;;  %s1698_s11 = sphi %s1780_s11, %s2194_s11   ;;  %s1694_s10 = sphi %s1778_s10, %s2197_s10   ;;  %s1690_s30 = sphi %s1776_s30, %s2196_s30  }
   0xb   : > { %2181 = sst [smem:[#allocation16_spill]] %s1698_s11  ;;  %s1414_s16 = sadd.s32 4294967294, %s1710_s14  }
   0xc   : > { %s47_s17 = sadd.s32 1, %s1706_s13  ;;  %s56_s18 = sadd.s32 1, %s1698_s11 }
   0xd   : > { %p49_p0 = scmp.ge.s32.totalorder %s47_s17, 2  ;;  %p63_p1 = scmp.ne.s32.totalorder %s1698_s11, %s1694_s10 }
   0xe   : > { %p64_p2 = scmp.eq.s32.totalorder %s1710_s14, 0  ;;  %p69_p3 = scmp.ne.s32.totalorder %s1694_s10, %s1690_s30 }
   0xf   : > { %s2201_s17 = smov (%p49_p0, %s47_s17), 0  ;;  %p70_p5 = scmp.eq.s32.totalorder %s1413_s15, 0 }
  0x10   : > { %2182 = sst [smem:[#allocation17_spill]] %s2201_s17  ;;  %p1817_p4 = por %p64_p2, %p63_p1 }
  0x11   : > { %s51_s20 = ssub.s32 %s1706_s13, %s2201_s17  ;;  %p277_p6 = scmp.eq.s32.totalorder %s1413_s15, 1 }
  0x12   : > { %p54_p7 = scmp.eq.s32.totalorder %s51_s20, 0  ;;  %p1823_p8 = por %p70_p5, %p69_p3 }
  0x13   : > { %p1827_p9 = por %p277_p6, %p63_p1  ;;  %p283_p10 = scmp.eq.s32.totalorder %s1414_s16, 1 }
  0x14   : > { %s1832_s23 = scalar_select %p54_p7, %s1698_s11, %s56_s18  }
  0x15   : > { %p1834_p11 = por %p283_p10, %p69_p3  ;;  %p1416_p12 = scmp.ge.s32.totalorder %s1710_s14, 2 }
  0x16   : > { %2186 = sst [smem:[#allocation18_spill]] %s1832_s23  ;;  %p1465_p13 = scmp.lt.s32.totalorder %s1710_s14, 2 }
  0x17   : > { %s2187_s24 = scalar_select %p1834_p11, 1, 0 }
  0x18   : > { %s1841_s25 = sand.u32 1, %s1698_s11   ;;  %s1418_s27 = sshll.u32 %s1706_s13, 3 }
  0x19   : > { %2188 = sst [smem:[#allocation19_spill]] %s2187_s24  ;;  %s1417_s26 = sshll.u32 %s1841_s25, 3 }
  0x1a   : > { %s2189_s0 = sld [smem:[#allocation20_spill]]  ;;  %s325_s16 = scalar_lea.vmem [#allocation6], %s1417_s26 }
  0x1b   : > { %s334_s18 = sshll.u32 %s325_s16, 4  ;;  %p1850_p0 = pnand %p1465_p13, %p1817_p4  ;;  %s335_s18 = int_to_ptr.vmem [resolvable:$true] %s334_s18 }
  0x1c   : > { %p1422_p1 = scmp.ge.s32.totalorder %s1710_s14, 1  ;;  %p373_p2 = scmp.lt.s32.totalorder %s1710_s14, 3 }
  0x1d   : > { %s322_s23 = scalar_lea.sflag [#allocation7], %s1841_s25  ;;  %s1446_s26 = sshll.u32 %s1706_s13, 5 }
  0x1e   : > { %p374_p3 = pnand %p1422_p1, %p373_p2  ;;  %s353_s11 = scalar_lea.sflag [#allocation10], %s1841_s25 }
  0x1f   : > { %s1712_s24 = smov 128   ;;  %s1713_s30 = smov 8  }
  0x20   : > { %s330_s15 = scalar_lea.hbm %s2189_s0, %s1418_s27  ;;  %s1419_s27 = sshll.u32 %s1841_s25, 5 }
  0x21   : > { %s332_s20 = sshll.u32 %s330_s15, 4  ;;  %s362_s15 = scalar_lea.hbm %s2167_s2, %s1446_s26  ;;  %s333_s20 = int_to_ptr.hbm [resolvable:$true] %s332_s20 }
  0x22   : > { %1457 = dma.hbm_to_vmem [thread:$0]  (!%p1850_p0), %s333_s20, 128, %s335_s18, %s322_s23  }
  0x23   : > { %s356_s16 = scalar_lea.vmem [#allocation9], %s1419_s27  ;;  %s363_s0 = sshll.u32 %s362_s15, 4  ;;  %s364_s0 = int_to_ptr.hbm [resolvable:$true] %s363_s0 }
  0x24   : > { %s365_s19 = sshll.u32 %s356_s16, 4  ;;  %377 = sbr.rel (%p374_p3) target bundleno = 1530 (0x5fa), region = 56  ;;  %s366_s19 = int_to_ptr.vmem [resolvable:$true] %s365_s19 }
  0x25   : > { %1460 = dma.hbm_to_vmem [thread:$0]  (!%p1850_p0), %s364_s0, 512, %s366_s19, %s353_s11, %s1712_s24, %s1712_s24, %s1713_s30  }
  0x26   : > { %s1868_s23 = sand.u32 (!%p374_p3), 1, %s1694_s10  }
  0x27   : > { %s1423_s18 = sshll.u32 (!%p374_p3), %s1868_s23, 3  ;;  %s380_s20 = scalar_lea.sflag (!%p374_p3), [#allocation7], %s1868_s23 }
  0x28   : > { %s383_s27 = scalar_lea.vmem (!%p374_p3), [#allocation6], %s1423_s18 }
  0x29   : > { %1677 = dma.done.wait (%p1823_p8), %s380_s20, 128  }
  0x2a   : > { %1679 = vsyncadd (%p1823_p8), %s380_s20, 4294967168  ;;  %s1424_s0 = sshll.u32 %s1868_s23, 5  ;;  %s390_s30 = scalar_lea.sflag [#allocation10], %s1868_s23 }
  0x2b   : > { %s1880_s11 = scalar_lea.vmem [#allocation9], %s1424_s0 }
  0x2c   : > { %1681 = dma.done.wait (%p1823_p8), %s390_s30, 512  }
  0x2d   : > { %1683 = vsyncadd (%p1823_p8), %s390_s30, 4294966784  ;;  %v458_v0 = vld [vmem:[%s2168_s3 + $0x18] sm:$0xff]  ;;  %v457_v1 = vld [vmem:[%s2168_s3 + $0x10] sm:$0xff]  ;;  %vm463_vm0 = vcmask 261120   ;;  %s1714_s20 = smov 112   ;;  %s1715_s0 = smov 96  }
  0x2e   : > { %479 = vmatpush.msra.mxu0 %v458_v0  ;;  %v456_v2 = vld [vmem:[%s2168_s3 + $0x8] sm:$0xff]  ;;  %v455_v3 = vld [vmem:[%s2168_s3] sm:$0xff]  ;;  %s1716_s30 = smov 80   ;;  %p442_p4 = scmp.lt.s32.totalorder %s1702_s12, 1  ;;  %v1717_v8 = vmov 1983009808  }
  0x2f   : > { %v1898_v4 = vld [vmem:[%s383_s27] sm:$0xff]  ;;  %v503_v9 = vunpack.c.l.s4 %v1717_v8  ;;  %vm498_vm1 = vcmask 1047556   ;;  %vm608_vm2 = vcmask 130048   ;;  %v1718_v19 = vmov 1934713408   ;;  %s1723_s28 = smov 32  }
  0x30   : > { %480 = vmatpush.msra.mxu0 %v457_v1  ;;  %v1532_v5 = vld [vmem:[%s2169_s4] ss:$0 sm:$0xff]  ;;  %s443_s27 = scalar_select %p442_p4, %s1702_s12, 1  ;;  %v527_v20 = vunpack.c.l.s4 %v1718_v19  ;;  %vm613_vm3 = vcmask 7168   ;;  %vm751_vm4 = vcmask 64512  }
  0x31   : > { %v1910_v15 = vunpack.c.0.s8 %v503_v9  ;;  %s1724_s29 = smov 16   ;;  %s1443_s19 = sshll.u32 %s1702_s12, 3 }
  0x32   : > { %481 = vmatpush.msra.mxu0 %v456_v2  ;;  %s1447_s17 = sshll.u32 %s443_s27, 5  ;;  %v1919_v26 = vunpack.c.0.s8 %v527_v20  ;;  %s441_s12 = scalar_lea.vmem [#allocation11], %s1423_s18 }
  0x33   : > { %s449_s26 = scalar_lea.vmem %s2166_s1, %s1447_s17  ;;  %s1282_s17 = scalar_lea.hbm %s2174_s9, %s1443_s19 }
  0x34   : > { %482 = vmatpush.msra.mxu0 %v455_v3  ;;  %v626_v13 = vld [vmem:[%s449_s26] sm:$0xff]  ;;  %v627_v14 = vld [vmem:[%s449_s26 + $0x8] sm:$0xff]  ;;  %v629_v23 = vld [vmem:[%s449_s26 + $0x18] sm:$0xff]  ;;  %s1644_s18 = scalar_lea.hbm %s2174_s9, 16 }
  0x35   : > { %1428 = vmatmul.msk.f32.vlgmr.msra.gmra.mxu0 %vm463_vm0, %v1898_v4  ;;  %1429 = vmatpush.xpose.msk.msra.mxu1 %vm608_vm2, %v626_v13  ;;  %v628_v29 = vld [vmem:[%s449_s26 + $0x10] sm:$0xff]  ;;  %s1284_s26 = sshll.u32 %s441_s12, 4  ;;  %s1285_s26 = int_to_ptr.vmem [resolvable:$true] %s1284_s26 }
  0x36   : > { %1431 = vmatpush.xpose.msk.msra.mxu3 %vm608_vm2, %v627_v14 }
  0x39   : > { %1435 = vmatpush.xpose.msk.msrb.mxu1 %vm608_vm2, %v629_v23 }
  0x3a   : > { %1433 = vmatpush.xpose.msk.msrb.mxu3 %vm608_vm2, %v628_v29 }
  0xb2   : > { %v484_v6 = vpop.f32.mrf.mxu0 }
  0xb3   : > { %v485_v7 = vadd.f32 %v1532_v5, %v484_v6 }
  0xb5   : > { %488 = vrot.lane.b32.xlu1 %v485_v7, %s1714_s20  ;;  %491 = vrot.lane.b32.xlu0 %v485_v7, %s1715_s0  ;;  %v500_v12 = vrot.slane %v485_v7, 4 }
  0xbd   : > { %494 = vrot.lane.b32.xlu0 %v485_v7, %s1716_s30 }
 0x127   : > { %v492_v10 = vpop.permute.xlu0 %491  ;;  %v489_v17 = vpop.permute.xlu1 %488 }
 0x128   : > { %v497_v11 = vrot.slane %v492_v10, 4  ;;  %v501_v16 = vsel %vm498_vm1, %v492_v10, %v500_v12  ;;  %v512_v22 = vrot.slane %v489_v17, 4 }
 0x129   : > { %v509_v21 = vperm.slane %v501_v16, %v1910_v15 }
 0x12a   : > { %v499_v18 = vsel %vm498_vm1, %v497_v11, %v485_v7 }
 0x12b   : > { %v505_v24 = vperm.slane %v499_v18, %v1910_v15  ;;  %v536_v30 = vrot.slane %v509_v21, 4 }
 0x12d   : > { %v524_v33 = vrot.slane %v505_v24, 4 }
 0x12f   : > { %v495_v25 = vpop.permute.xlu0 %494 }
 0x130   : > { %v510_v27 = vrot.slane %v495_v25, 4  ;;  %v513_v28 = vsel %vm498_vm1, %v495_v25, %v512_v22  ;;  %v1719_v25 = vmov -2.3819763e+38  }
 0x131   : > { %v521_v31 = vperm.slane %v513_v28, %v1910_v15  ;;  %614 = vst.msk [vmem:[#allocation3] sm:$0xff] %vm613_vm3, %v1719_v25 }
 0x132   : > { %v511_v32 = vsel %vm498_vm1, %v510_v27, %v489_v17  ;;  %615 = vst.msk [vmem:[#allocation3 + $0x8] sm:$0xff] %vm613_vm3, %v1719_v25 }
 0x133   : > { %v517_v34 = vperm.slane %v511_v32, %v1910_v15  ;;  %v534_v35 = vrot.slane %v521_v31, 4  ;;  %v537_v36 = vsel %vm498_vm1, %v521_v31, %v536_v30  ;;  %616 = vst.msk [vmem:[#allocation3 + $0x10] sm:$0xff] %vm613_vm3, %v1719_v25 }
 0x134   : > { %v545_v37 = vperm.slane %v537_v36, %v1919_v26  ;;  %617 = vst.msk [vmem:[#allocation3 + $0x18] sm:$0xff] %vm613_vm3, %v1719_v25 }
 0x135   : > { %v522_v38 = vrot.slane %v517_v34, 4  ;;  %v525_v39 = vsel %vm498_vm1, %v517_v34, %v524_v33  ;;  %v535_v40 = vsel %vm498_vm1, %v534_v35, %v509_v21 }
 0x136   : > { %v533_v41 = vperm.slane %v525_v39, %v1919_v26  ;;  %v541_v42 = vperm.slane %v535_v40, %v1919_v26  ;;  %v552_v43 = vrot.slane %v545_v37, 4  ;;  %v1720_v39 = vmov 0  }
 0x137   : > { %v523_v44 = vsel %vm498_vm1, %v522_v38, %v505_v24  ;;  %1529 = vset.pattern.permute.xlu2 %v1720_v39  ;;  %1530 = vset.pattern.permute.xlu1 %v1720_v39  ;;  %v1721_v40 = vmov 0.0  }
 0x138   : > { %v529_v45 = vperm.slane %v523_v44, %v1919_v26  ;;  %v548_v46 = vrot.slane %v533_v41, 4  ;;  %v550_v47 = vrot.slane %v541_v42, 4  ;;  %v553_v48 = vsel %vm498_vm1, 0.0, %v552_v43  ;;  %1531 = vset.pattern.permute.xlu0 %v1720_v39  ;;  %624 = vst.msk [vmem:[#allocation5 + $0x10] sm:$0xff] %vm608_vm2, %v1721_v40  ;;  %v1994_v41 = vld [vmem:[#allocation3] sm:$0xff] }
 0x139   : > { %v565_v49 = vsel %vm498_vm1, %v552_v43, %v541_v42  ;;  %v570_v50 = vrot.slane %v553_v48, 4  ;;  %618 = vst.msk [vmem:[#allocation4] sm:$0xff] %vm613_vm3, %v1721_v40 }
 0x13a   : > { %v546_v51 = vrot.slane %v529_v45, 4  ;;  %v549_v52 = vsel %vm498_vm1, 0.0, %v548_v46  ;;  %v551_v53 = vsel %vm498_vm1, 0.0, %v550_v47  ;;  %v554_v54 = vsel %vm498_vm1, %v548_v46, %v529_v45  ;;  %619 = vst.msk [vmem:[#allocation4 + $0x8] sm:$0xff] %vm613_vm3, %v1721_v40  ;;  %v748_v45 = vld [vmem:[#allocation3 + $0x8] sm:$0xff] }
 0x13b   : > { %v558_v55 = vperm.slane %v554_v54, %v1910_v15  ;;  %v559_v56 = vrot.slane %v549_v52, 4  ;;  %v569_v57 = vperm.slane %v565_v49, %v1910_v15  ;;  %v571_v58 = vsel %vm498_vm1, %v570_v50, %v551_v53  ;;  %620 = vst.msk [vmem:[#allocation4 + $0x10] sm:$0xff] %vm613_vm3, %v1721_v40  ;;  %v750_v46 = vld [vmem:[#allocation3 + $0x18] sm:$0xff] }
 0x13c   : > { %v547_v59 = vsel %vm498_vm1, 0.0, %v546_v51  ;;  %v575_v60 = vperm.slane %v571_v58, %v1910_v15  ;;  %621 = vst.msk [vmem:[#allocation4 + $0x18] sm:$0xff] %vm613_vm3, %v1721_v40  ;;  %v749_v51 = vld [vmem:[#allocation3 + $0x10] sm:$0xff] }
 0x13d   : > { %v560_v61 = vsel %vm498_vm1, %v559_v56, %v547_v59  ;;  %v578_v62 = vrot.slane %v558_v55, 4  ;;  %v590_v63 = vrot.slane %v569_v57, 4  ;;  %622 = vst.msk [vmem:[#allocation5] sm:$0xff] %vm608_vm2, %v1721_v40 }
 0x13e   : > { %v564_v0 = vperm.slane %v560_v61, %v1910_v15  ;;  %v588_v1 = vrot.slane %v575_v60, 4  ;;  %623 = vst.msk [vmem:[#allocation5 + $0x8] sm:$0xff] %vm608_vm2, %v1721_v40 }
 0x13f   : > { %v591_v2 = vsel %vm498_vm1, %v575_v60, %v590_v63  ;;  %625 = vst.msk [vmem:[#allocation5 + $0x18] sm:$0xff] %vm608_vm2, %v1721_v40  ;;  %v630_v63 = vld [vmem:[%s1880_s11] sm:$0xff] }
 0x140   : > { %v576_v3 = vrot.slane %v564_v0, 4  ;;  %v579_v5 = vsel %vm498_vm1, %v564_v0, %v578_v62  ;;  %v589_v6 = vsel %vm498_vm1, %v588_v1, %v569_v57  ;;  %v599_v7 = vperm.slane %v591_v2, %v1919_v26  ;;  %887 = vmatpush.msra.mxu2 %v630_v63  ;;  %v631_v0 = vld [vmem:[%s1880_s11 + $0x8] sm:$0xff]  ;;  %v632_v1 = vld [vmem:[%s1880_s11 + $0x10] sm:$0xff] }
 0x141   : > { %v587_v8 = vperm.slane %v579_v5, %v1919_v26  ;;  %v595_v9 = vperm.slane %v589_v6, %v1919_v26  ;;  %933 = vmatpush.msrb.mxu0 %v632_v1  ;;  %v633_v6 = vld [vmem:[%s1880_s11 + $0x18] sm:$0xff]  ;;  %s1722_s11 = smov 48  }
 0x142   : > { %v577_v10 = vsel %vm498_vm1, %v576_v3, %v558_v55  ;;  %v604_v11 = vrot.slane %v599_v7, 4 }
 0x143   : > { %v583_v12 = vperm.slane %v577_v10, %v1919_v26  ;;  %v600_v13 = vrot.slane %v595_v9, 4  ;;  %v606_v14 = vrot.slane %v587_v8, 4 }
 0x144   : > { %v605_v16 = vsel %vm498_vm1, %v604_v11, %v587_v8 }
 0x145   : > { %v601_v17 = vsel %vm498_vm1, %v600_v13, %v583_v12  ;;  %v602_v18 = vrot.slane %v583_v12, 4  ;;  %v607_v19 = vsel %vm498_vm1, %v599_v7, %v606_v14  ;;  %611 = vst.msk [vmem:[#allocation2 + $0x10] sm:$0xff] %vm608_vm2, %v605_v16 }
 0x146   : > { %609 = vst.msk [vmem:[#allocation2] sm:$0xff] %vm608_vm2, %v601_v17 }
 0x147   : > { %v603_v20 = vsel %vm498_vm1, %v595_v9, %v602_v18  ;;  %612 = vst.msk [vmem:[#allocation2 + $0x18] sm:$0xff] %vm608_vm2, %v607_v19 }
 0x148   : > { %610 = vst.msk [vmem:[#allocation2 + $0x8] sm:$0xff] %vm608_vm2, %v603_v20 }
 0x14c   : > { %v636_v24 = vld [vmem:[#allocation2 + $0x10] sm:$0xff] }
 0x14d   : > { %v634_v21 = vld [vmem:[#allocation2] sm:$0xff] }
 0x14e   : > { %1430 = vmatmul.msk.f32.vlgmr.msra.gmra.mxu1 %vm608_vm2, %v634_v21  ;;  %v637_v23 = vld [vmem:[#allocation2 + $0x18] sm:$0xff] }
 0x14f   : > { %v635_v22 = vld [vmem:[#allocation2 + $0x8] sm:$0xff]  ;;  %956 = vmatpush.msra.mxu1 %v633_v6  ;;  %v844_v6 = vld [vmem:[#allocation5 + $0x18] sm:$0xff] }
 0x150   : > { %1432 = vmatmul.msk.f32.vlgmr.msra.gmra.mxu3 %vm608_vm2, %v635_v22 }
 0x151   : > { %910 = vmatpush.msra.mxu3 %v631_v0 }
 0x156   : > { %1436 = vmatmul.msk.f32.vlgmr.msrb.gmra.mxu1 %vm608_vm2, %v637_v23 }
 0x158   : > { %1434 = vmatmul.msk.f32.vlgmr.msrb.gmra.mxu3 %vm608_vm2, %v636_v24 }
 0x1cb   : > { %v662_v27 = vpop.f32.mrf.mxu1 }
 0x1cc   : > { %v1970_v28 = vmul.f32 0.25, %v662_v27 }
 0x1ce   : > { %v752_v29 = vsel %vm751_vm4, %v1970_v28, -inf }
 0x1cf   : > { %753 = vmax.xlane.f32.xlu1 %v752_v29 }
 0x1d3   : > { %v688_v30 = vpop.f32.mrf.mxu3  ;;  %v740_v31 = vpop.f32.mrf.mxu1 }
 0x1d4   : > { %v1974_v32 = vmul.f32 0.25, %v688_v30  ;;  %v1976_v33 = vmul.f32 0.25, %v740_v31 }
 0x1d6   : > { %v755_v34 = vsel %vm751_vm4, %v1974_v32, -inf  ;;  %v761_v35 = vsel %vm751_vm4, %v1976_v33, -inf }
 0x1d7   : > { %756 = vmax.xlane.f32.xlu2 %v755_v34  ;;  %762 = vmax.xlane.f32.xlu0 %v761_v35  ;;  %v814_v35 = vld [vmem:[#allocation4 + $0x10] sm:$0xff] }
 0x1db   : > { %v714_v36 = vpop.f32.mrf.mxu3 }
 0x1dc   : > { %v1982_v37 = vmul.f32 0.25, %v714_v36 }
 0x1de   : > { %v758_v38 = vsel %vm751_vm4, %v1982_v37, -inf }
 0x1df   : > { %759 = vmax.xlane.f32.xlu2 %v758_v38 }
 0x242   : > { %v754_v42 = vpop.xlane.xlu1 %753 }
 0x243   : > { %v1997_v43 = vmax.f32 %v1994_v41, %v754_v42 }
 0x245   : > { %v768_v44 = vsub.f32 %v1994_v41, %v1997_v43  ;;  %969 = vst.msk [vmem:[#allocation3] sm:$0xff] %vm613_vm3, %v1997_v43  ;;  %782 = vperm.xlu2 %1529, %v1997_v43   ;;  %v842_v41 = vld [vmem:[#allocation5 + $0x8] sm:$0xff] }
 0x247   : > { %v772_v25 = vmul.f32 1.442695, %v768_v44  ;;  %v843_v44 = vld [vmem:[#allocation5 + $0x10] sm:$0xff] }
 0x24a   : > { %v757_v47 = vpop.xlane.xlu2 %756  ;;  %v763_v48 = vpop.xlane.xlu0 %762 }
 0x24b   : > { %v765_v49 = vmax.f32 %v748_v45, %v757_v47  ;;  %v767_v50 = vmax.f32 %v750_v46, %v763_v48 }
 0x24d   : > { %970 = vst.msk [vmem:[#allocation3 + $0x8] sm:$0xff] %vm613_vm3, %v765_v49  ;;  %787 = vperm.xlu2 %1529, %v765_v49   ;;  %797 = vperm.xlu1 %1530, %v767_v50   ;;  %v771_v56 = vsub.f32 %v750_v46, %v767_v50  ;;  %v769_v59 = vsub.f32 %v748_v45, %v765_v49 }
 0x24e   : > { %972 = vst.msk [vmem:[#allocation3 + $0x18] sm:$0xff] %vm613_vm3, %v767_v50 }
 0x24f   : > { %v778_v57 = vmul.f32 1.442695, %v771_v56  ;;  %v774_v60 = vmul.f32 1.442695, %v769_v59  ;;  %v815_v59 = vld [vmem:[#allocation4 + $0x18] sm:$0xff] }
 0x252   : > { %v760_v52 = vpop.xlane.xlu2 %759 }
 0x253   : > { %v766_v53 = vmax.f32 %v749_v51, %v760_v52 }
 0x255   : > { %v770_v54 = vsub.f32 %v749_v51, %v766_v53  ;;  %971 = vst.msk [vmem:[#allocation3 + $0x10] sm:$0xff] %vm613_vm3, %v766_v53  ;;  %792 = vperm.xlu2 %1529, %v766_v53  }
 0x257   : > { %v776_v55 = vmul.f32 1.442695, %v770_v54 }
 0x259   : > { %1536 = vpow2.f32 %v776_v55 }
 0x25a   : > { %1538 = vpow2.f32 %v778_v57 }
 0x25b   : > { %1540 = vpow2.f32 %v774_v60 }
 0x25f   : > { %v2007_v58 = vpop.eup %1536 }
 0x260   : > { %857 = vperm.xlu1 %1530, %v2007_v58   ;;  %v2010_v61 = vpop.eup %1538  ;;  %v818_v36 = vmul.f32 %v2007_v58, %v814_v35 }
 0x261   : > { %v2013_v62 = vpop.eup %1540  ;;  %v819_v60 = vmul.f32 %v2010_v61, %v815_v59 }
 0x268   : > { %862 = vperm.xlu1 %1530, %v2010_v61  }
 0x270   : > { %852 = vperm.xlu1 %1530, %v2013_v62  }
 0x29f   : > { %v783_v2 = vpop.permute.xlu2 %782 }
 0x2a0   : > { %v800_v3 = vsub.f32 %v1970_v28, %v783_v2  ;;  %v812_v28 = vld [vmem:[#allocation4] sm:$0xff] }
 0x2a2   : > { %v804_v5 = vmul.f32 1.442695, %v800_v3  ;;  %v813_v3 = vld [vmem:[#allocation4 + $0x8] sm:$0xff] }
 0x2a4   : > { %1542 = vpow2.f32 %v804_v5 }
 0x2a7   : > { %v788_v7 = vpop.permute.xlu2 %787 }
 0x2a8   : > { %v801_v8 = vsub.f32 %v1974_v32, %v788_v7 }
 0x2aa   : > { %v1543_v9 = vpop.eup %1542  ;;  %v806_v10 = vmul.f32 1.442695, %v801_v8 }
 0x2ab   : > { %1437 = vmatmul.msk.f32.vlgmr.msra.gmra.mxu2 %vm751_vm4, %v1543_v9  ;;  %v820_v11 = vsel %vm751_vm4, %v1543_v9, 0.0 }
 0x2ac   : > { %1544 = vpow2.f32 %v806_v10  ;;  %821 = vadd.xlane.f32.xlu0 %v820_v11  ;;  %v817_v10 = vmul.f32 %v2013_v62, %v813_v3 }
 0x2af   : > { %v793_v12 = vpop.permute.xlu2 %792 }
 0x2b0   : > { %v802_v13 = vsub.f32 %v1982_v37, %v793_v12 }
 0x2b2   : > { %v1545_v14 = vpop.eup %1544  ;;  %v808_v16 = vmul.f32 1.442695, %v802_v13 }
 0x2b3   : > { %1438 = vmatmul.msk.f32.vlgmr.msra.gmra.mxu3 %vm751_vm4, %v1545_v14  ;;  %v823_v24 = vsel %vm751_vm4, %v1545_v14, 0.0 }
 0x2b4   : > { %1546 = vpow2.f32 %v808_v16 }
 0x2ba   : > { %v1547_v17 = vpop.eup %1546 }
 0x2bb   : > { %1439 = vmatmul.msk.f32.vlgmr.msrb.gmra.mxu0 %vm751_vm4, %v1547_v17  ;;  %v826_v18 = vsel %vm751_vm4, %v1547_v17, 0.0 }
 0x2bc   : > { %827 = vadd.xlane.f32.xlu2 %v826_v18 }
 0x2bf   : > { %v798_v19 = vpop.permute.xlu1 %797 }
 0x2c0   : > { %v803_v20 = vsub.f32 %v1976_v33, %v798_v19 }
 0x2c2   : > { %v810_v21 = vmul.f32 1.442695, %v803_v20 }
 0x2c4   : > { %1548 = vpow2.f32 %v810_v21 }
 0x2c5   : > { %1550 = vpow2.f32 %v772_v25 }
 0x2ca   : > { %v1549_v22 = vpop.eup %1548 }
 0x2cb   : > { %1440 = vmatmul.msk.f32.vlgmr.msra.gmra.mxu1 %vm751_vm4, %v1549_v22  ;;  %v829_v23 = vsel %vm751_vm4, %v1549_v22, 0.0  ;;  %v1551_v27 = vpop.eup %1550 }
 0x2cc   : > { %830 = vadd.xlane.f32.xlu0 %v829_v23  ;;  %v816_v30 = vmul.f32 %v1551_v27, %v812_v28 }
 0x2d2   : > { %v858_v29 = vpop.permute.xlu1 %857 }
 0x2d3   : > { %v867_v50 = vmul.f32 %v858_v29, %v843_v44 }
 0x2d4   : > { %824 = vadd.xlane.f32.xlu0 %v823_v24 }
 0x2da   : > { %v863_v33 = vpop.permute.xlu1 %862 }
 0x2db   : > { %v868_v11 = vmul.f32 %v863_v33, %v844_v6 }
 0x2e2   : > { %v853_v42 = vpop.permute.xlu1 %852 }
 0x2e3   : > { %v866_v46 = vmul.f32 %v853_v42, %v842_v41 }
 0x2e8   : > { %847 = vperm.xlu0 %1531, %v1551_v27  }
 0x31f   : > { %v822_v31 = vpop.xlane.xlu0 %821 }
 0x320   : > { %v832_v32 = vadd.f32 %v822_v31, %v816_v30  ;;  %v841_v30 = vld [vmem:[#allocation5] sm:$0xff] }
 0x322   : > { %837 = vst.msk [vmem:[#allocation4] sm:$0xff] %vm613_vm3, %v832_v32 }
 0x329   : > { %v980_v34 = vld [vmem:[#allocation4] sm:$0xff] }
 0x32a   : > { %1552 = vrcp.f32 %v980_v34  ;;  %v995_v45 = vand.u32 2147483648, %v980_v34  ;;  %v993_v48 = vand.u32 2147483647, %v980_v34  ;;  %vm989_vm6 = vweird.f32 %v980_v34 }
 0x32c   : > { %v996_v54 = vor.u32 1.1754944e-38, %v995_v45  ;;  %vm994_vm8 = vcmp.eq.f32.partialorder %v993_v48, 8.507059e+37 }
 0x32f   : > { %v828_v37 = vpop.xlane.xlu2 %827 }
 0x330   : > { %v1553_v38 = vpop.eup %1552  ;;  %v834_v39 = vadd.f32 %v828_v37, %v818_v36 }
 0x331   : > { %v985_v40 = vmul.f32 %v1553_v38, %v980_v34  ;;  %vm990_vm5 = vweird.f32 %v1553_v38 }
 0x332   : > { %839 = vst.msk [vmem:[#allocation4 + $0x10] sm:$0xff] %vm613_vm3, %v834_v39  ;;  %vm991_vm7 = vmor %vm989_vm6, %vm990_vm5 }
 0x333   : > { %v986_v43 = vsub.f32 1.0, %v985_v40 }
 0x335   : > { %v987_v47 = vmul.f32 %v1553_v38, %v986_v43 }
 0x336   : > { %v912_v49 = vpop.f32.mrf.mxu3 }
 0x337   : > { %v962_v51 = vadd.f32 %v912_v49, %v866_v46  ;;  %v988_v52 = vadd.f32 %v1553_v38, %v987_v47 }
 0x338   : > { %v935_v53 = vpop.f32.mrf.mxu0 }
 0x339   : > { %966 = vst.msk [vmem:[#allocation5 + $0x8] sm:$0xff] %vm608_vm2, %v962_v51  ;;  %v963_v55 = vadd.f32 %v935_v53, %v867_v50  ;;  %v992_v56 = vsel %vm991_vm7, %v1553_v38, %v988_v52  ;;  %v982_v57 = vld [vmem:[#allocation4 + $0x10] sm:$0xff]  ;;  %v889_v38 = vpop.f32.mrf.mxu2 }
 0x33a   : > { %v997_v58 = vsel %vm994_vm8, %v996_v54, %v992_v56  ;;  %1554 = vrcp.f32 %v982_v57  ;;  %v1023_v7 = vand.u32 2147483648, %v982_v57  ;;  %v1021_v9 = vand.u32 2147483647, %v982_v57 }
 0x33b   : > { %967 = vst.msk [vmem:[#allocation5 + $0x10] sm:$0xff] %vm608_vm2, %v963_v55  ;;  %1042 = vperm.xlu1 %1530, %v997_v58   ;;  %vm1017_vm10 = vweird.f32 %v982_v57  ;;  %vm1204_vm8 = vcmask 523264  }
 0x33c   : > { %v1024_v16 = vor.u32 1.1754944e-38, %v1023_v7  ;;  %vm1022_vm12 = vcmp.eq.f32.partialorder %v1021_v9, 8.507059e+37 }
 0x33f   : > { %v831_v63 = vpop.xlane.xlu0 %830 }
 0x340   : > { %v1555_v0 = vpop.eup %1554  ;;  %v835_v1 = vadd.f32 %v831_v63, %v819_v60  ;;  %v977_v63 = vld [vmem:[#allocation5 + $0x8] sm:$0xff] }
 0x341   : > { %v1013_v2 = vmul.f32 %v1555_v0, %v982_v57  ;;  %vm1018_vm9 = vweird.f32 %v1555_v0 }
 0x342   : > { %840 = vst.msk [vmem:[#allocation4 + $0x18] sm:$0xff] %vm613_vm3, %v835_v1  ;;  %vm1019_vm11 = vmor %vm1017_vm10, %vm1018_vm9  ;;  %v978_v49 = vld [vmem:[#allocation5 + $0x10] sm:$0xff] }
 0x343   : > { %v1014_v5 = vsub.f32 1.0, %v1013_v2 }
 0x345   : > { %v1015_v8 = vmul.f32 %v1555_v0, %v1014_v5 }
 0x347   : > { %v825_v12 = vpop.xlane.xlu0 %824  ;;  %v1016_v13 = vadd.f32 %v1555_v0, %v1015_v8 }
 0x348   : > { %v833_v61 = vadd.f32 %v825_v12, %v817_v10  ;;  %v958_v14 = vpop.f32.mrf.mxu1 }
 0x349   : > { %v964_v17 = vadd.f32 %v958_v14, %v868_v11  ;;  %v1020_v18 = vsel %vm1019_vm11, %v1555_v0, %v1016_v13  ;;  %v983_v19 = vld [vmem:[#allocation4 + $0x18] sm:$0xff] }
 0x34a   : > { %838 = vst.msk [vmem:[#allocation4 + $0x8] sm:$0xff] %vm613_vm3, %v833_v61  ;;  %v1025_v20 = vsel %vm1022_vm12, %v1024_v16, %v1020_v18  ;;  %1556 = vrcp.f32 %v983_v19  ;;  %v1037_v24 = vand.u32 2147483648, %v983_v19  ;;  %v1035_v27 = vand.u32 2147483647, %v983_v19 }
 0x34b   : > { %968 = vst.msk [vmem:[#allocation5 + $0x18] sm:$0xff] %vm608_vm2, %v964_v17  ;;  %1052 = vperm.xlu2 %1529, %v1025_v20   ;;  %vm1031_vm14 = vweird.f32 %v983_v19 }
 0x34c   : > { %v1038_v31 = vor.u32 1.1754944e-38, %v1037_v24  ;;  %vm1036_vm3 = vcmp.eq.f32.partialorder %v1035_v27, 8.507059e+37 }
 0x350   : > { %v1557_v62 = vpop.eup %1556 }
 0x351   : > { %v1027_v21 = vmul.f32 %v1557_v62, %v983_v19  ;;  %v981_v22 = vld [vmem:[#allocation4 + $0x8] sm:$0xff]  ;;  %vm1032_vm13 = vweird.f32 %v1557_v62 }
 0x352   : > { %1558 = vrcp.f32 %v981_v22  ;;  %vm1033_vm15 = vmor %vm1031_vm14, %vm1032_vm13  ;;  %v1009_v39 = vand.u32 2147483648, %v981_v22  ;;  %v1007_v42 = vand.u32 2147483647, %v981_v22  ;;  %vm1003_vm5 = vweird.f32 %v981_v22  ;;  %v979_v56 = vld [vmem:[#allocation5 + $0x18] sm:$0xff] }
 0x353   : > { %v1028_v23 = vsub.f32 1.0, %v1027_v21 }
 0x354   : > { %v1010_v44 = vor.u32 1.1754944e-38, %v1009_v39  ;;  %vm1008_vm7 = vcmp.eq.f32.partialorder %v1007_v42, 8.507059e+37 }
 0x355   : > { %v1029_v25 = vmul.f32 %v1557_v62, %v1028_v23 }
 0x357   : > { %v1030_v28 = vadd.f32 %v1557_v62, %v1029_v25 }
 0x358   : > { %v1559_v29 = vpop.eup %1558 }
 0x359   : > { %v1034_v32 = vsel %vm1033_vm15, %v1557_v62, %v1030_v28  ;;  %v999_v33 = vmul.f32 %v1559_v29, %v981_v22  ;;  %vm1004_vm4 = vweird.f32 %v1559_v29 }
 0x35a   : > { %v848_v34 = vpop.permute.xlu0 %847  ;;  %v1039_v35 = vsel %vm1036_vm3, %v1038_v31, %v1034_v32  ;;  %vm1005_vm6 = vmor %vm1003_vm5, %vm1004_vm4 }
 0x35b   : > { %v865_v36 = vmul.f32 %v848_v34, %v841_v30  ;;  %1057 = vperm.xlu1 %1530, %v1039_v35   ;;  %v1000_v37 = vsub.f32 1.0, %v999_v33 }
 0x35d   : > { %v961_v40 = vadd.f32 %v889_v38, %v865_v36  ;;  %v1001_v41 = vmul.f32 %v1559_v29, %v1000_v37 }
 0x35f   : > { %965 = vst.msk [vmem:[#allocation5] sm:$0xff] %vm608_vm2, %v961_v40  ;;  %v1002_v43 = vadd.f32 %v1559_v29, %v1001_v41 }
 0x361   : > { %v1006_v45 = vsel %vm1005_vm6, %v1559_v29, %v1002_v43 }
 0x362   : > { %v1011_v46 = vsel %vm1008_vm7, %v1010_v44, %v1006_v45 }
 0x363   : > { %1047 = vperm.xlu1 %1530, %v1011_v46  }
 0x366   : > { %v976_v50 = vld [vmem:[#allocation5] sm:$0xff] }
 0x3a5   : > { %v1053_v48 = vpop.permute.xlu2 %1052 }
 0x3a6   : > { %v1062_v51 = vmul.f32 %v1053_v48, %v978_v49 }
 0x3a8   : > { %v1064_v54 = vrot.slane %v1062_v51, 4 }
 0x3ad   : > { %v1043_v47 = vpop.permute.xlu1 %1042 }
 0x3ae   : > { %v1060_v52 = vmul.f32 %v1043_v47, %v976_v50 }
 0x3b0   : > { %v1067_v55 = vrot.slane %v1060_v52, 4  ;;  %v1066_v57 = vsel %vm498_vm1, %v1064_v54, %v1060_v52 }
 0x3b1   : > { %v1072_v60 = vperm.slane %v1066_v57, %v1910_v15 }
 0x3b2   : > { %v1068_v59 = vsel %vm498_vm1, %v1062_v51, %v1067_v55 }
 0x3b3   : > { %v1076_v3 = vperm.slane %v1068_v59, %v1910_v15  ;;  %v1091_v7 = vrot.slane %v1072_v60, 4  ;;  %v1199_v59 = vld [vmem:[%s2170_s5 + $0x38] sm:$0xff] }
 0x3b4   : > { %1216 = vmatpush.msrb.mxu2 %v1199_v59 }
 0x3b5   : > { %v1103_v10 = vrot.slane %v1076_v3, 4 }
 0x3cd   : > { %v1058_v53 = vpop.permute.xlu1 %1057 }
 0x3ce   : > { %v1063_v58 = vmul.f32 %v1058_v53, %v979_v56 }
 0x3d0   : > { %v1077_v1 = vrot.slane %v1063_v58, 4 }
 0x3d5   : > { %v1048_v0 = vpop.permute.xlu1 %1047 }
 0x3d6   : > { %v1061_v2 = vmul.f32 %v1048_v0, %v977_v63  ;;  %v1196_v63 = vld [vmem:[%s2170_s5 + $0x20] sm:$0xff]  ;;  %v1195_v0 = vld [vmem:[%s2170_s5 + $0x18] sm:$0xff] }
 0x3d8   : > { %v1078_v5 = vsel %vm498_vm1, %v1077_v1, %v1061_v2  ;;  %v1079_v6 = vrot.slane %v1061_v2, 4  ;;  %v1194_v1 = vld [vmem:[%s2170_s5 + $0x10] sm:$0xff]  ;;  %v1193_v2 = vld [vmem:[%s2170_s5 + $0x8] sm:$0xff] }
 0x3d9   : > { %v1084_v8 = vperm.slane %v1078_v5, %v1910_v15 }
 0x3da   : > { %v1080_v9 = vsel %vm498_vm1, %v1063_v58, %v1079_v6 }
 0x3db   : > { %v1088_v11 = vperm.slane %v1080_v9, %v1910_v15  ;;  %v1089_v12 = vrot.slane %v1084_v8, 4  ;;  %v1092_v13 = vsel %vm498_vm1, %v1084_v8, %v1091_v7 }
 0x3dc   : > { %v1100_v61 = vperm.slane %v1092_v13, %v1919_v26 }
 0x3dd   : > { %v1090_v14 = vsel %vm498_vm1, %v1089_v12, %v1072_v60  ;;  %v1101_v16 = vrot.slane %v1088_v11, 4  ;;  %v1104_v17 = vsel %vm498_vm1, %v1088_v11, %v1103_v10  ;;  %v1197_v60 = vld [vmem:[%s2170_s5 + $0x28] sm:$0xff]  ;;  %v1533_v11 = vld [vmem:[%s2171_s6] ss:$0 sm:$0xff] }
 0x3de   : > { %v1096_v18 = vperm.slane %v1090_v14, %v1919_v26  ;;  %v1112_v19 = vperm.slane %v1104_v17, %v1919_v26  ;;  %v1115_v20 = vrot.slane %v1100_v61, 4 }
 0x3df   : > { %v1102_v62 = vsel %vm498_vm1, %v1101_v16, %v1076_v3  ;;  %v1192_v3 = vld [vmem:[%s2170_s5] sm:$0xff]  ;;  %v1725_v16 = vmov 32.0  }
 0x3e0   : > { %v1108_v21 = vperm.slane %v1102_v62, %v1919_v26  ;;  %v1113_v22 = vrot.slane %v1096_v18, 4  ;;  %v1116_v23 = vsel %vm498_vm1, 0.0, %v1115_v20  ;;  %v1119_v24 = vrot.slane %v1112_v19, 4 }
 0x3e1   : > { %v1121_v25 = vsel %vm498_vm1, %v1115_v20, %v1096_v18  ;;  %v1126_v27 = vrot.slane %v1116_v23, 4  ;;  %1560 = vrcp.f32 %v1725_v16 }
 0x3e2   : > { %v1120_v28 = vsel %vm498_vm1, 0.0, %v1119_v24  ;;  %v1114_v29 = vsel %vm498_vm1, 0.0, %v1113_v22  ;;  %v1117_v30 = vrot.slane %v1108_v21, 4  ;;  %v1125_v31 = vperm.slane %v1121_v25, %v1910_v15 }
 0x3e3   : > { %v1137_v32 = vrot.slane %v1120_v28, 4  ;;  %v1127_v33 = vsel %vm498_vm1, %v1126_v27, %v1114_v29  ;;  %v1132_v34 = vsel %vm498_vm1, %v1119_v24, %v1108_v21 }
 0x3e4   : > { %v1118_v35 = vsel %vm498_vm1, 0.0, %v1117_v30  ;;  %v1131_v36 = vperm.slane %v1127_v33, %v1910_v15  ;;  %v1136_v37 = vperm.slane %v1132_v34, %v1910_v15  ;;  %v1145_v38 = vrot.slane %v1125_v31, 4 }
 0x3e5   : > { %v1138_v39 = vsel %vm498_vm1, %v1137_v32, %v1118_v35 }
 0x3e6   : > { %v1142_v40 = vperm.slane %v1138_v39, %v1910_v15  ;;  %v1146_v41 = vsel %vm498_vm1, %v1131_v36, %v1145_v38  ;;  %v1157_v42 = vrot.slane %v1136_v37, 4  ;;  %v1143_v43 = vrot.slane %v1131_v36, 4  ;;  %v1534_v36 = vld [vmem:[%s2172_s7] ss:$0 sm:$0xff] }
 0x3e7   : > { %v1154_v44 = vperm.slane %v1146_v41, %v1919_v26  ;;  %v1561_v17 = vpop.eup %1560  ;;  %v1535_v39 = vld [vmem:[%s2173_s8] ss:$0 sm:$0xff] }
 0x3e8   : > { %v1158_v45 = vsel %vm498_vm1, %v1142_v40, %v1157_v42  ;;  %v1144_v46 = vsel %vm498_vm1, %v1143_v43, %v1125_v31  ;;  %v1155_v47 = vrot.slane %v1142_v40, 4  ;;  %v1234_v18 = vmul.f32 32.0, %v1561_v17 }
 0x3e9   : > { %v1166_v48 = vperm.slane %v1158_v45, %v1919_v26  ;;  %v1173_v49 = vrot.slane %v1154_v44, 4  ;;  %v1150_v50 = vperm.slane %v1144_v46, %v1919_v26 }
 0x3ea   : > { %v1156_v51 = vsel %vm498_vm1, %v1155_v47, %v1136_v37  ;;  %v1235_v19 = vsub.f32 1.0, %v1234_v18 }
 0x3eb   : > { %v1174_v15 = vsel %vm498_vm1, %v1166_v48, %v1173_v49  ;;  %v1171_v52 = vrot.slane %v1166_v48, 4  ;;  %v1162_v53 = vperm.slane %v1156_v51, %v1919_v26  ;;  %v1169_v54 = vrot.slane %v1150_v50, 4  ;;  %v1198_v26 = vld [vmem:[%s2170_s5 + $0x30] sm:$0xff] }
 0x3ec   : > { %1184 = vrot.lane.b32.xlu1 %v1174_v15, %s1722_s11  ;;  %1217 = vmatpush.msrb.mxu2 %v1198_v26  ;;  %v1236_v20 = vmul.f32 %v1561_v17, %v1235_v19  ;;  %s1286_s11 = sshll.u32 %s1282_s17, 4  ;;  %s1287_s11 = int_to_ptr.hbm [resolvable:$true] %s1286_s11 }
 0x3ed   : > { %v1172_v55 = vsel %vm498_vm1, %v1171_v52, %v1154_v44  ;;  %v1167_v56 = vrot.slane %v1162_v53, 4  ;;  %v1170_v57 = vsel %vm498_vm1, %v1162_v53, %v1169_v54 }
 0x3ee   : > { %1180 = vrot.lane.b32.xlu0 %v1172_v55, %s1723_s28  ;;  %1176 = vrot.lane.b32.xlu2 %v1170_v57, %s1724_s29  ;;  %v1237_v62 = vadd.f32 %v1561_v17, %v1236_v20  ;;  %s1271_s28 = scalar_lea.sflag [#allocation8], %s1868_s23  ;;  %s1638_s29 = sshra.s32 %s1287_s11, 4  ;;  %s1639_s29 = int_to_ptr.hbm [resolvable:$true] %s1638_s29 }
 0x3ef   : > { %v1168_v58 = vsel %vm498_vm1, %v1167_v56, %v1150_v50  ;;  %1218 = vmatpush.msrb.mxu2 %v1197_v60  ;;  %vm1190_vm1 = vcmask 392192   ;;  %s1640_s15 = scalar_lea.hbm %s1639_s29, 8  ;;  %p1645_p8 = scmp.lt.s32.totalorder %s1639_s29, %s2174_s9 }
 0x3f0   : > { %p1641_p5 = scmp.ne.s32.totalorder %s1639_s29, %s1640_s15  ;;  %p1646_p10 = scmp.lt.s32.totalorder %s1644_s18, %s1640_s15 }
 0x3f1   : > { %1219 = vmatpush.msrb.mxu2 %v1196_v63 }
 0x3f2   : > { %p1642_p6 = pnand %p1641_p5, %p1827_p9  ;;  %p1647_p13 = por %p1646_p10, %p1645_p8 }
 0x3f3   : > { %1220 = vmatpush.msrb.mxu2 %v1195_v0 }
 0x3f4   : > { %p1643_p7 = pneg %p1642_p6 }
 0x3f5   : > { %1221 = vmatpush.msrb.mxu2 %v1194_v1 }
 0x3f6   : > { %p1648_p0 = pnand %p1647_p13, %p1643_p7 }
 0x3f7   : > { %1222 = vmatpush.msrb.mxu2 %v1193_v2 }
 0x3f9   : > { %1223 = vmatpush.msrb.mxu2 %v1192_v3 }
 0x448   : > { %v1177_v5 = vpop.permute.xlu2 %1176 }
 0x449   : > { %v1187_v6 = vsel %vm608_vm2, %v1168_v58, %v1177_v5  ;;  %vm1238_vm2 = vweird.f32 %v1561_v17 }
 0x44a   : > { %v1239_v21 = vsel %vm1238_vm2, %v1561_v17, %v1237_v62 }
 0x45e   : > { %v1185_v8 = vpop.permute.xlu1 %1184 }
 0x460   : > { %v1181_v7 = vpop.permute.xlu0 %1180 }
 0x461   : > { %v1189_v9 = vsel %vm463_vm0, %v1187_v6, %v1181_v7 }
 0x462   : > { %v1191_v10 = vsel %vm1190_vm1, %v1189_v9, %v1185_v8 }
 0x463   : > { %1441 = vmatmul.msk.f32.vlgmr.msrb.gmra.mxu2 %vm1204_vm8, %v1191_v10 }
 0x4e6   : > { %v1225_v12 = vpop.f32.mrf.mxu2 }
 0x4e7   : > { %v1226_v13 = vadd.f32 %v1533_v11, %v1225_v12 }
 0x4e9   : > { %v1229_v61 = vadd.f32 %v1226_v13, %v1898_v4 }
 0x4eb   : > { %v1230_v14 = vsel %vm463_vm0, %v1229_v61, 0.0 }
 0x4ec   : > { %1231 = vadd.xlane.f32.xlu2 %v1230_v14 }
 0x55f   : > { %v1232_v22 = vpop.xlane.xlu2 %1231 }
 0x560   : > { %v1240_v23 = vmul.f32 %v1239_v21, %v1232_v22 }
 0x562   : > { %v1241_v24 = vsub.f32 %v1229_v61, %v1240_v23 }
 0x564   : > { %v1242_v25 = vmul.f32 %v1241_v24, %v1241_v24 }
 0x566   : > { %v1243_v27 = vsel %vm463_vm0, %v1242_v25, 0.0 }
 0x567   : > { %1244 = vadd.xlane.f32.xlu0 %v1243_v27 }
 0x5da   : > { %v1245_v4 = vpop.xlane.xlu0 %1244 }
 0x5db   : > { %v1246_v28 = vmul.f32 %v1245_v4, %v1239_v21 }
 0x5dd   : > { %v1247_v29 = vadd.f32 1e-05, %v1246_v28 }
 0x5df   : > { %1562 = vrsqrt.f32 %v1247_v29  ;;  %vm1254_vm10 = vweird.f32 %v1247_v29 }
 0x5e5   : > { %v1563_v30 = vpop.eup %1562 }
 0x5e6   : > { %v1249_v31 = vmul.f32 %v1563_v30, %v1247_v29  ;;  %vm1255_vm9 = vweird.f32 %v1563_v30 }
 0x5e7   : > { %vm1256_vm11 = vmor %vm1254_vm10, %vm1255_vm9 }
 0x5e8   : > { %v1250_v32 = vmul.f32 %v1563_v30, %v1249_v31 }
 0x5ea   : > { %v1251_v33 = vmul.f32 0.5, %v1250_v32 }
 0x5ec   : > { %v1252_v34 = vsub.f32 1.5, %v1251_v33 }
 0x5ee   : > { %v1253_v35 = vmul.f32 %v1563_v30, %v1252_v34 }
 0x5f0   : > { %v1257_v37 = vsel %vm1256_vm11, %v1563_v30, %v1253_v35 }
 0x5f1   : > { %v1258_v38 = vmul.f32 %v1257_v37, %v1241_v24 }
 0x5f3   : > { %v1263_v40 = vmul.f32 %v1534_v36, %v1258_v38 }
 0x5f5   : > { %v1268_v41 = vadd.f32 %v1535_v39, %v1263_v40 }
 0x5f7   : > { %1269 = vst.msk [vmem:[%s441_s12] sm:$0xff] %vm463_vm0, %v1268_v41 }
 0x5f8   : > { %1651 = shalt.err (!%p1648_p0)
}
 0x5f9   : > { %1452 = dma.vmem_to_hbm [thread:$0]  (%p1827_p9), %s1285_s26, 128, %s1287_s11, %s1271_s28  }
 0x5fa PF: > { %s2191_s23 = sld [smem:[#allocation15_spill]]  ;;  %p1462_p1 = pnand %p1416_p12, %p1834_p11 }
 0x5fc   : > { %p1463_p2 = pneg %p1462_p1 }
 0x600   : > { %s1298_s30 = sand.u32 1, %s2191_s23  }
 0x601   : > { %s1299_s27 = scalar_lea.sflag [#allocation8], %s1298_s30 }
 0x602   : > { %1685 = dma.done.wait (%p1463_p2), %s1299_s27, 128  }
 0x603   : > { %1687 = vsyncadd (%p1463_p2), %s1299_s27, 4294967168  ;;  %s28_s14 = sadd.s32 1, %s1710_s14   ;;  %s2193_s17 = sld [smem:[#allocation16_spill]] }
 0x604   : > { %p25_p3 = scmp.ge.s32.totalorder %s28_s14, 4   ;;  %s2194_s11 = sld [smem:[#allocation18_spill]] }
 0x605   : > { %s2195_s22 = sld [smem:[#allocation17_spill]]  ;;  %s2196_s30 = smov %s1694_s10 }
 0x606   : > { %s2198_s12 = smov %s1706_s13 }
 0x607   :  { %27 = sbr.rel (!%p25_p3) target bundleno = 10 (0xa), region = 125 }
 0x609   : > { %s2197_s10 = smov %s2193_s17 }
 0x60b   : > { %s2199_s13 = smov %s2195_s22 }
 0x60c   :  { %1305 = vsyncpa [#allocation7], 1 }
 0x60d   :  { %1307 = vsyncpa [#allocation7 + $0x1], 1 }
 0x60e   :  { %1308 = vsyncpa [#allocation10], 1 }
 0x60f   :  { %1310 = vsyncpa [#allocation10 + $0x1], 1 }
 0x610   :  { %1311 = vsyncpa [#allocation8], 1 }
 0x611   :  { %1313 = vsyncpa [#allocation8 + $0x1], 1 }

</bundles_post_ra>
